<compile_context>
chip_gen: v7x
topology: tpu7x:2x2x1
jax: 0.10.0
libtpu: 0.0.40
codegen_flags: <defaults>
</compile_context>

<pallas_src>
import functools

import jax
import jax.numpy as jnp
from jax.experimental import pallas as pl
from jax.experimental.pallas import tpu as pltpu


def attention_kernel(x_ref, wqkv_ref, wproj_ref, bproj_ref, o_ref, acc_ref, *,
                     head_dim):
    """One (batch, head) pair per grid step.

    x_ref     : (1, N, C)          bf16 VMEM (resident across the head axis)
    wqkv_ref  : (H, C, 3*Dh)       bf16 VMEM (resident, per-head Q|K|V weights,
                                   scale folded into the Q columns)
    wproj_ref : (H, Dh, C)         bf16 VMEM (resident, per-head proj rows)
    bproj_ref : (1, C)             f32  VMEM
    o_ref     : (1, N, C)          f32  VMEM
    acc_ref   : (N, C)             f32  VMEM scratch (output-proj accumulator)
    """
    h = pl.program_id(1)
    n_heads = pl.num_programs(1)

    x = x_ref[0]                                    # (N, C)  bf16
    w_h = wqkv_ref[h]                               # (C, 3*Dh) bf16

    # Per-head QKV projection (bf16 x bf16 -> f32 on the MXU).
    qkv = jnp.dot(x, w_h, preferred_element_type=jnp.float32)       # (N, 3*Dh)

    q = qkv[:, :head_dim].astype(jnp.bfloat16)
    k = qkv[:, head_dim:2 * head_dim].astype(jnp.bfloat16)
    v = qkv[:, 2 * head_dim:].astype(jnp.bfloat16)

    # Scores: contract on the head dim directly (no k.T relayout).
    s = jax.lax.dot_general(q, k, (((1,), (1,)), ((), ())),
                            preferred_element_type=jnp.float32)     # (N, N)

    # Numerically stable softmax; stats in f32, divide -> EUP reciprocal.
    s = s - jnp.max(s, axis=-1, keepdims=True)
    p = jnp.exp(s)
    denom = jnp.sum(p, axis=-1, keepdims=True)
    p = (p * pl.reciprocal(denom, approx=True)).astype(jnp.bfloat16)

    head_out = jnp.dot(p, v, preferred_element_type=jnp.float32)    # (N, Dh)

    @pl.when(h == 0)
    def _():
        acc_ref[...] = jnp.zeros_like(acc_ref)

    # Fused output projection, accumulated over heads in f32 (no concat).
    acc_ref[...] += jnp.dot(head_out.astype(jnp.bfloat16), wproj_ref[h],
                            preferred_element_type=jnp.float32)

    @pl.when(h == n_heads - 1)
    def _():
        o_ref[0] = (acc_ref[...] + bproj_ref[...]).astype(o_ref.dtype)


def attention_pallas(x, w_qkv, w_proj, b_proj, *, num_heads):
    B, N, C = x.shape
    head_dim = C // num_heads
    scale = head_dim ** (-0.5)

    # ---- host-side parameter prep ---------------------------------------
    # Fold the softmax scale into the Q columns, regroup weights per head and
    # cast to bf16 so every in-kernel matmul is bf16 x bf16 -> f32.
    def split_heads(w):                              # (C, C) -> (H, C, Dh)
        return jnp.transpose(w.reshape(C, num_heads, head_dim), (1, 0, 2))

    wq = w_qkv[:, :C] * scale
    wk = w_qkv[:, C:2 * C]
    wv = w_qkv[:, 2 * C:]
    w_qkv_heads = jnp.concatenate(
        [split_heads(wq), split_heads(wk), split_heads(wv)],
        axis=-1).astype(jnp.bfloat16)                # (H, C, 3*Dh)
    w_proj_heads = w_proj.reshape(num_heads, head_dim, C).astype(jnp.bfloat16)
    x_bf = x.astype(jnp.bfloat16)
    b2 = b_proj.reshape(1, C).astype(jnp.float32)

    kernel = functools.partial(attention_kernel, head_dim=head_dim)

    flops = (2 * B * N * C * 3 * C                       # qkv projection
             + 2 * B * num_heads * N * N * head_dim * 2  # q@k and p@v
             + 2 * B * N * C * C)                        # output projection
    bytes_accessed = (B * N * C * 2                      # x (bf16)
                      + C * 3 * C * 2 + C * C * 2 + C * 4
                      + B * N * C * 4)                   # output (f32)
    cost = pl.CostEstimate(flops=flops,
                           transcendentals=B * num_heads * N * N,
                           bytes_accessed=bytes_accessed)

    return pl.pallas_call(
        kernel,
        out_shape=jax.ShapeDtypeStruct((B, N, C), jnp.float32),
        grid_spec=pltpu.PrefetchScalarGridSpec(
            num_scalar_prefetch=0,
            grid=(B, num_heads),
            in_specs=[
                pl.BlockSpec((1, N, C), lambda b, h: (b, 0, 0)),        # x
                pl.BlockSpec((num_heads, C, 3 * head_dim),
                             lambda b, h: (0, 0, 0)),                   # w_qkv (resident)
                pl.BlockSpec((num_heads, head_dim, C),
                             lambda b, h: (0, 0, 0)),                   # w_proj (resident)
                pl.BlockSpec((1, C), lambda b, h: (0, 0)),              # b_proj
            ],
            out_specs=pl.BlockSpec((1, N, C), lambda b, h: (b, 0, 0)),
            scratch_shapes=[pltpu.VMEM((N, C), jnp.float32)],
        ),
        compiler_params=pltpu.CompilerParams(
            dimension_semantics=("parallel", "arbitrary")),
        cost_estimate=cost,
    )(x_bf, w_qkv_heads, w_proj_heads, b2)


def attention_reference(x, w_qkv, w_proj, b_proj, *, num_heads):
    """Pure-JAX reference matching the PyTorch forward (dropout=0, no qk_norm)."""
    B, N, C = x.shape
    head_dim = C // num_heads
    scale = head_dim ** (-0.5)
    qkv = x @ w_qkv                                          # (B, N, 3C)
    qkv = qkv.reshape(B, N, 3, num_heads, head_dim)
    qkv = jnp.transpose(qkv, (2, 0, 3, 1, 4))                # (3, B, H, N, Dh)
    q, k, v = qkv[0], qkv[1], qkv[2]
    attn = jnp.einsum("bhnd,bhmd->bhnm", q * scale, k)
    attn = jax.nn.softmax(attn, axis=-1)
    out = jnp.einsum("bhnm,bhmd->bhnd", attn, v)             # (B, H, N, Dh)
    out = jnp.transpose(out, (0, 2, 1, 3)).reshape(B, N, C)
    return out @ w_proj + b_proj


if __name__ == "__main__":
    # Small shapes consistent with the module: dim divisible by num_heads,
    # N and C friendly to the (8, 128) tile.
    B, N, C = 2, 128, 256
    num_heads = 4

    key = jax.random.PRNGKey(0)
    k_x, k_wqkv, k_wproj, k_bproj = jax.random.split(key, 4)

    x = jax.random.normal(k_x, (B, N, C), dtype=jnp.float32)
    # Deterministic parameter init (qkv_bias=False per module default).
    w_qkv = jax.random.normal(k_wqkv, (C, 3 * C), dtype=jnp.float32) * 0.05
    w_proj = jax.random.normal(k_wproj, (C, C), dtype=jnp.float32) * 0.05
    b_proj = jax.random.normal(k_bproj, (C,), dtype=jnp.float32) * 0.05

    out = attention_pallas(x, w_qkv, w_proj, b_proj, num_heads=num_heads)
    out = jax.block_until_ready(out)
    assert out.shape == (B, N, C) and out.dtype == jnp.float32

    # Reference evaluated on bf16-rounded operands (the kernel runs bf16 MXU
    # matmuls with f32 accumulation); tolerance covers the remaining
    # intermediate bf16 casts (q/k/p/head_out) and the approx reciprocal.
    rnd = lambda a: a.astype(jnp.bfloat16).astype(jnp.float32)
    ref = attention_reference(rnd(x), rnd(w_qkv), rnd(w_proj), b_proj,
                              num_heads=num_heads)
    assert jnp.allclose(out, ref, atol=5e-2, rtol=5e-2), (
        "mismatch vs reference: max|diff|=%e"
        % float(jnp.max(jnp.abs(out - ref))))

    print("KERNEL_OK")
</pallas_src>

<mosaic_0001>
module attributes {stable_mosaic.version = 11 : i64} {
  func.func @attention_kernel(%arg0: i32, %arg1: i32, %arg2: memref<1x128x256xbf16, #tpu.memory_space<vmem>>, %arg3: memref<4x256x192xbf16, #tpu.memory_space<vmem>>, %arg4: memref<4x64x256xbf16, #tpu.memory_space<vmem>>, %arg5: memref<1x256xf32, #tpu.memory_space<vmem>>, %arg6: memref<1x128x256xf32, #tpu.memory_space<vmem>>, %arg7: memref<128x256xf32, #tpu.memory_space<vmem>>) attributes {dimension_semantics = [#tpu.dimension_semantics<parallel>, #tpu.dimension_semantics<arbitrary>], iteration_bounds = array<i64: 2, 4>, scalar_prefetch = 0 : i64, scratch_operands = 1 : i64, tpu.core_type = #tpu.core_type<tc>, window_params = [{transform_indices = @transform_0, window_bounds = array<i64: 1, 128, 256>}, {pipeline_mode = #tpu.pipeline_mode<synchronous>, transform_indices = @transform_1, window_bounds = array<i64: 4, 256, 192>}, {pipeline_mode = #tpu.pipeline_mode<synchronous>, transform_indices = @transform_2, window_bounds = array<i64: 4, 64, 256>}, {pipeline_mode = #tpu.pipeline_mode<synchronous>, transform_indices = @transform_3, window_bounds = array<i64: 1, 256>}, {transform_indices = @transform_4, window_bounds = array<i64: 1, 128, 256>}]} {
    %c0 = arith.constant 0 : index
    %c0_0 = arith.constant 0 : index
    %c0_1 = arith.constant 0 : index
    %0 = vector.load %arg2[%c0, %c0_0, %c0_1] : memref<1x128x256xbf16, #tpu.memory_space<vmem>>, vector<1x128x256xbf16>
    %1 = vector.shape_cast %0 : vector<1x128x256xbf16> to vector<128x256xbf16>
    %2 = arith.index_cast %arg1 : i32 to index
    %c0_2 = arith.constant 0 : index
    %c0_3 = arith.constant 0 : index
    %3 = vector.load %arg3[%2, %c0_2, %c0_3] : memref<4x256x192xbf16, #tpu.memory_space<vmem>>, vector<1x256x192xbf16>
    %4 = vector.shape_cast %3 : vector<1x256x192xbf16> to vector<256x192xbf16>
    %cst = arith.constant dense<0.000000e+00> : vector<128x192xf32>
    %5 = tpu.matmul %1, %4, %cst {dimension_numbers = #tpu.dot_dimension_numbers<[1], [0], [0], [1], [0, 0, 1, 1], [], []>} : vector<128x256xbf16>, vector<256x192xbf16>, vector<128x192xf32> -> vector<128x192xf32>
    %6 = vector.extract_strided_slice %5 {offsets = [0, 0], sizes = [128, 64], strides = [1, 1]} : vector<128x192xf32> to vector<128x64xf32>
    %7 = arith.truncf %6 : vector<128x64xf32> to vector<128x64xbf16>
    %8 = vector.extract_strided_slice %5 {offsets = [0, 64], sizes = [128, 64], strides = [1, 1]} : vector<128x192xf32> to vector<128x64xf32>
    %9 = arith.truncf %8 : vector<128x64xf32> to vector<128x64xbf16>
    %10 = vector.extract_strided_slice %5 {offsets = [0, 128], sizes = [128, 64], strides = [1, 1]} : vector<128x192xf32> to vector<128x64xf32>
    %11 = arith.truncf %10 : vector<128x64xf32> to vector<128x64xbf16>
    %cst_4 = arith.constant dense<0.000000e+00> : vector<128x128xf32>
    %12 = tpu.matmul %7, %9, %cst_4 {dimension_numbers = #tpu.dot_dimension_numbers<[1], [1], [0], [0], [0, 0, 1, 0], [], []>} : vector<128x64xbf16>, vector<128x64xbf16>, vector<128x128xf32> -> vector<128x128xf32>
    %cst_5 = arith.constant dense<0xFF800000> : vector<128xf32>
    %13 = vector.multi_reduction <maximumf>, %12, %cst_5 [1] : vector<128x128xf32> to vector<128xf32>
    %14 = vector.shape_cast %13 : vector<128xf32> to vector<128x1xf32>
    %15 = vector.broadcast %14 : vector<128x1xf32> to vector<128x128xf32>
    %16 = arith.subf %12, %15 : vector<128x128xf32>
    %17 = math.exp %16 : vector<128x128xf32>
    %cst_6 = arith.constant dense<0.000000e+00> : vector<128xf32>
    %18 = vector.multi_reduction <add>, %17, %cst_6 [1] : vector<128x128xf32> to vector<128xf32>
    %19 = vector.shape_cast %18 : vector<128xf32> to vector<128x1xf32>
    %20 = tpu.reciprocal %19 {approx = true} : vector<128x1xf32> -> vector<128x1xf32>
    %21 = vector.broadcast %20 : vector<128x1xf32> to vector<128x128xf32>
    %22 = arith.mulf %17, %21 : vector<128x128xf32>
    %23 = arith.truncf %22 : vector<128x128xf32> to vector<128x128xbf16>
    %cst_7 = arith.constant dense<0.000000e+00> : vector<128x64xf32>
    %24 = tpu.matmul %23, %11, %cst_7 {dimension_numbers = #tpu.dot_dimension_numbers<[1], [0], [0], [1], [0, 0, 1, 1], [], []>} : vector<128x128xbf16>, vector<128x64xbf16>, vector<128x64xf32> -> vector<128x64xf32>
    %c0_i32 = arith.constant 0 : i32
    %25 = arith.cmpi eq, %arg1, %c0_i32 : i32
    %26 = arith.extui %25 : i1 to i32
    %c0_i32_8 = arith.constant 0 : i32
    %27 = arith.cmpi ne, %26, %c0_i32_8 : i32
    scf.if %27 {
      %cst_17 = arith.constant 0.000000e+00 : f32
      %39 = vector.broadcast %cst_17 : f32 to vector<128x256xf32>
      %c0_18 = arith.constant 0 : index
      %c0_19 = arith.constant 0 : index
      %40 = vector.load %arg7[%c0_18, %c0_19] : memref<128x256xf32, #tpu.memory_space<vmem>>, vector<128x256xf32>
      tpu.vector_store %arg7[%c0_18, %c0_19], %39 {strides = array<i32>} : memref<128x256xf32, #tpu.memory_space<vmem>>, vector<128x256xf32>,
    } else {
    }
    %c0_9 = arith.constant 0 : index
    %c0_10 = arith.constant 0 : index
    %28 = vector.load %arg7[%c0_9, %c0_10] : memref<128x256xf32, #tpu.memory_space<vmem>>, vector<128x256xf32>
    %29 = arith.truncf %24 : vector<128x64xf32> to vector<128x64xbf16>
    %30 = arith.index_cast %arg1 : i32 to index
    %c0_11 = arith.constant 0 : index
    %c0_12 = arith.constant 0 : index
    %31 = vector.load %arg4[%30, %c0_11, %c0_12] : memref<4x64x256xbf16, #tpu.memory_space<vmem>>, vector<1x64x256xbf16>
    %32 = vector.shape_cast %31 : vector<1x64x256xbf16> to vector<64x256xbf16>
    %cst_13 = arith.constant dense<0.000000e+00> : vector<128x256xf32>
    %33 = tpu.matmul %29, %32, %cst_13 {dimension_numbers = #tpu.dot_dimension_numbers<[1], [0], [0], [1], [0, 0, 1, 1], [], []>} : vector<128x64xbf16>, vector<64x256xbf16>, vector<128x256xf32> -> vector<128x256xf32>
    %34 = arith.addf %28, %33 : vector<128x256xf32>
    %c0_14 = arith.constant 0 : index
    %c0_15 = arith.constant 0 : index
    %35 = vector.load %arg7[%c0_14, %c0_15] : memref<128x256xf32, #tpu.memory_space<vmem>>, vector<128x256xf32>
    tpu.vector_store %arg7[%c0_14, %c0_15], %34 {strides = array<i32>} : memref<128x256xf32, #tpu.memory_space<vmem>>, vector<128x256xf32>,
    %c3_i32 = arith.constant 3 : i32
    %36 = arith.cmpi eq, %arg1, %c3_i32 : i32
    %37 = arith.extui %36 : i1 to i32
    %c0_i32_16 = arith.constant 0 : i32
    %38 = arith.cmpi ne, %37, %c0_i32_16 : i32
    scf.if %38 {
      %c0_17 = arith.constant 0 : index
      %c0_18 = arith.constant 0 : index
      %39 = vector.load %arg7[%c0_17, %c0_18] : memref<128x256xf32, #tpu.memory_space<vmem>>, vector<128x256xf32>
      %c0_19 = arith.constant 0 : index
      %c0_20 = arith.constant 0 : index
      %40 = vector.load %arg5[%c0_19, %c0_20] : memref<1x256xf32, #tpu.memory_space<vmem>>, vector<1x256xf32>
      %41 = vector.broadcast %40 : vector<1x256xf32> to vector<128x256xf32>
      %42 = arith.addf %39, %41 : vector<128x256xf32>
      %c0_21 = arith.constant 0 : index
      %c0_22 = arith.constant 0 : index
      %c0_23 = arith.constant 0 : index
      %43 = vector.load %arg6[%c0_21, %c0_22, %c0_23] : memref<1x128x256xf32, #tpu.memory_space<vmem>>, vector<1x128x256xf32>
      %44 = vector.shape_cast %43 : vector<1x128x256xf32> to vector<128x256xf32>
      %45 = vector.shape_cast %42 : vector<128x256xf32> to vector<1x128x256xf32>
      tpu.vector_store %arg6[%c0_21, %c0_22, %c0_23], %45 {strides = array<i32>} : memref<1x128x256xf32, #tpu.memory_space<vmem>>, vector<1x128x256xf32>,
    } else {
    }
    return
  }
  func.func @transform_0(%arg0: i32, %arg1: i32) -> (i32, i32, i32) {
    %c0_i32 = arith.constant 0 : i32
    %c0_i32_0 = arith.constant 0 : i32
    %c0_i32_1 = arith.constant 0 : i32
    return %arg0, %c0_i32, %c0_i32_0 : i32, i32, i32
  }
  func.func @transform_1(%arg0: i32, %arg1: i32) -> (i32, i32, i32) {
    %c0_i32 = arith.constant 0 : i32
    %c0_i32_0 = arith.constant 0 : i32
    %c0_i32_1 = arith.constant 0 : i32
    %c0_i32_2 = arith.constant 0 : i32
    return %c0_i32, %c0_i32_0, %c0_i32_1 : i32, i32, i32
  }
  func.func @transform_2(%arg0: i32, %arg1: i32) -> (i32, i32, i32) {
    %c0_i32 = arith.constant 0 : i32
    %c0_i32_0 = arith.constant 0 : i32
    %c0_i32_1 = arith.constant 0 : i32
    %c0_i32_2 = arith.constant 0 : i32
    return %c0_i32, %c0_i32_0, %c0_i32_1 : i32, i32, i32
  }
  func.func @transform_3(%arg0: i32, %arg1: i32) -> (i32, i32) {
    %c0_i32 = arith.constant 0 : i32
    %c0_i32_0 = arith.constant 0 : i32
    %c0_i32_1 = arith.constant 0 : i32
    return %c0_i32, %c0_i32_0 : i32, i32
  }
  func.func @transform_4(%arg0: i32, %arg1: i32) -> (i32, i32, i32) {
    %c0_i32 = arith.constant 0 : i32
    %c0_i32_0 = arith.constant 0 : i32
    %c0_i32_1 = arith.constant 0 : i32
    return %arg0, %c0_i32, %c0_i32_0 : i32, i32, i32
  }
}

</mosaic_0001>

<bundles_post_ra>
// kernel: tpu_custom_call.1
= control target key start
LH: loop header
LB: loop body
LE: loop exit
PB: predicated region body
PF: predicated region fallthrough
CT: control target
= control target key end

     0   :  { %9 = vsyncpa [#allocation4], 0  ;;  %s2635_s0 = inlined_call_operand.vmem [shape: bf16[2,128,256], index: 0, kind: input, shape index: {}]   ;;  %s2636_s1 = inlined_call_operand.vmem [shape: bf16[4,256,192], index: 1, kind: input, shape index: {}]   ;;  %s2637_s2 = inlined_call_operand.vmem [shape: bf16[4,64,256], index: 2, kind: input, shape index: {}]   ;;  %s2638_s3 = inlined_call_operand.vmem [shape: f32[1,256], index: 3, kind: input, shape index: {}]   ;;  %s2639_s4 = inlined_call_operand.hbm [shape: f32[2,128,256], index: 4, kind: output, shape index: {}]  }
   0x1   :  { %11 = vsyncpa [#allocation4 + $0x1], 0  ;;  %s2137_s15 = smov 0   ;;  %s2139_s16 = smov 0  }
   0x2   :  { %s2141_s17 = smov 0   ;;  %s2143_s18 = smov 0  }
   0x3   :  { %s2145_s19 = smov 0   ;;  %s2147_s20 = smov 0  }
   0x4   :  { %s2149_s21 = smov 0   ;;  %s2151_s22 = smov 0  }
   0x5 LB: > { %s1579_s23 = sadd.s32 4294967295, %s2104_s22   ;;  %s1580_s24 = sadd.s32 4294967294, %s2104_s22   ;;  %s2104_s22 = sphi %s2151_s22, %s17_s22   ;;  %s2100_s21 = sphi %s2149_s21, %s2648_s21   ;;  %s2096_s20 = sphi %s2147_s20, %s2647_s20   ;;  %s2092_s19 = sphi %s2145_s19, %s2646_s19   ;;  %s2088_s18 = sphi %s2143_s18, %s2645_s18   ;;  %s2084_s17 = sphi %s2141_s17, %s2644_s17   ;;  %s2080_s16 = sphi %s2139_s16, %s2643_s16   ;;  %s2076_s15 = sphi %s2137_s15, %s2642_s15  }
   0x6   : > { %s26_s25 = sadd.s32 1, %s2096_s20  ;;  %s29_s26 = sadd.s32 1, %s2100_s21 }
   0x7   : > { %p27_p0 = scmp.ge.s32.totalorder %s26_s25, 4  ;;  %p135_p1 = scmp.ne.s32.totalorder %s2084_s17, %s2080_s16 }
   0x8   : > { %p136_p2 = scmp.eq.s32.totalorder %s1579_s23, 7  ;;  %p141_p4 = scmp.ne.s32.totalorder %s2080_s16, %s2076_s15 }
   0x9   : > { %s2650_s25 = smov (%p27_p0, %s26_s25), 0  ;;  %s2652_s26 = smov (!%p27_p0, %s29_s26), %s2100_s21 }
   0xa   : > { %p2186_p3 = por %p136_p2, %p135_p1  ;;  %p31_p5 = scmp.ge.s32.totalorder %s2652_s26, 2 }
   0xb   : > { %p142_p6 = scmp.eq.s32.totalorder %s1580_s24, 7  ;;  %p1583_p7 = scmp.ge.s32.totalorder %s2104_s22, 1 }
   0xc   : > { %p177_p8 = scmp.lt.s32.totalorder %s2104_s22, 9  ;;  %s2654_s26 = smov (%p31_p5, %s2652_s26), 0 }
   0xd   : > { %p2196_p9 = por %p142_p6, %p141_p4  ;;  %s122_s29 = ssub.s32 %s2100_s21, %s2654_s26 }
   0xe   : > { %p178_p10 = pnand %p1583_p7, %p177_p8  ;;  %s125_s30 = sadd.s32 1, %s2084_s17 }
   0xf   : > { %p123_p11 = scmp.eq.s32.totalorder %s122_s29, 0  ;;  %s200_s6 = sand.u32 (!%p178_p10), 1, %s2080_s16   ;;  %vm653_vm0 = vcmask (!%p178_p10), 523264  }
  0x10   : > { %181 = sbr.rel (%p178_p10) target bundleno = 1553 (0x611), region = 36  ;;  %s1671_s7 = sshll.u32 (!%p178_p10), %s2088_s18, 8 }
  0x11   : > { %s2204_s5 = scalar_select %p123_p11, %s2084_s17, %s125_s30  }
  0x12   : > { %s2210_s8 = sshll.u32 (!%p178_p10), %s200_s6, 8  ;;  %s2215_s11 = scalar_lea.vmem (!%p178_p10), %s2636_s1, %s1671_s7 }
  0x13   : > { %v1862_v0 = vld [vmem:[%s2215_s11 + $0x4] ss:$8 sps:$4 sm:$0xff] (!%p178_p10)   ;;  %v1864_v1 = vld [vmem:[%s2215_s11] ss:$8 sps:$4 sm:$0xff] (!%p178_p10)   ;;  %v1865_v2 = vld [vmem:[%s2215_s11 + $0x14] ss:$8 sps:$4 sm:$0xff] (!%p178_p10)  }
  0x14   : > { %500 = vmatprep.subr.bf16.mxu0 (!%p178_p10), %v1862_v0  ;;  %v1867_v3 = vld [vmem:[%s2215_s11 + $0x10] ss:$8 sps:$4 sm:$0xff] (!%p178_p10)   ;;  %v1868_v4 = vld [vmem:[%s2215_s11 + $0x24] ss:$8 sps:$4 sm:$0xff] (!%p178_p10)   ;;  %v1870_v5 = vld [vmem:[%s2215_s11 + $0x20] ss:$8 sps:$4 sm:$0xff] (!%p178_p10)  }
  0x15   : > { %501 = vmatpush1.bf16.msra.mxu0 (!%p178_p10), %v1864_v1  ;;  %v1871_v6 = vld [vmem:[%s2215_s11 + $0x34] ss:$8 sps:$4 sm:$0xff] (!%p178_p10)   ;;  %p203_p12 = scmp.lt.s32.totalorder (!%p178_p10), %s2092_s19, 1  ;;  %v1873_v7 = vld [vmem:[%s2215_s11 + $0x30] ss:$8 sps:$4 sm:$0xff] (!%p178_p10)   ;;  %s2106_s29 = smov (!%p178_p10), 64  }
  0x16   : > { %502 = vmatprep.subr.bf16.mxu0 (!%p178_p10), %v1865_v2  ;;  %v1874_v8 = vld [vmem:[%s2215_s11 + $0x44] ss:$8 sps:$4 sm:$0xff] (!%p178_p10)   ;;  %v1876_v9 = vld [vmem:[%s2215_s11 + $0x40] ss:$8 sps:$4 sm:$0xff] (!%p178_p10)   ;;  %v1877_v10 = vld [vmem:[%s2215_s11 + $0x54] ss:$8 sps:$4 sm:$0xff] (!%p178_p10)  }
  0x17   : > { %s204_s12 = scalar_select %p203_p12, %s2092_s19, 1  ;;  %v1879_v11 = vld [vmem:[%s2215_s11 + $0x50] ss:$8 sps:$4 sm:$0xff]   ;;  %v1880_v12 = vld [vmem:[%s2215_s11 + $0x64] ss:$8 sps:$4 sm:$0xff]  }
  0x18   : > { %v1882_v14 = vld [vmem:[%s2215_s11 + $0x60] ss:$8 sps:$4 sm:$0xff]   ;;  %v1883_v15 = vld [vmem:[%s2215_s11 + $0x74] ss:$8 sps:$4 sm:$0xff]   ;;  %v1885_v16 = vld [vmem:[%s2215_s11 + $0x70] ss:$8 sps:$4 sm:$0xff]  }
  0x19   : > { %503 = vmatpush1.bf16.msra.mxu0 %v1867_v3  ;;  %s1670_s13 = sshll.u32 %s204_s12, 7  ;;  %v1886_v17 = vld [vmem:[%s2215_s11 + $0x84] ss:$8 sps:$4 sm:$0xff]   ;;  %v1888_v18 = vld [vmem:[%s2215_s11 + $0x80] ss:$8 sps:$4 sm:$0xff]   ;;  %s2469_s30 = scalar_lea.vmem [#allocation3], %s2210_s8 }
  0x1a   : > { %504 = vmatprep.subr.bf16.mxu0 %v1868_v4  ;;  %s2234_s24 = scalar_lea.vmem %s2635_s0, %s1670_s13  ;;  %v1889_v19 = vld [vmem:[%s2215_s11 + $0x94] ss:$8 sps:$4 sm:$0xff]   ;;  %v1891_v20 = vld [vmem:[%s2215_s11 + $0x90] ss:$8 sps:$4 sm:$0xff]   ;;  %v1892_v21 = vld [vmem:[%s2215_s11 + $0xa4] ss:$8 sps:$4 sm:$0xff]  }
  0x1b   : > { %v1912_v13 = vld [vmem:[%s2234_s24 + $0x4] ss:$8 sps:$4 sm:$0xff]   ;;  %v1894_v22 = vld [vmem:[%s2215_s11 + $0xa0] ss:$8 sps:$4 sm:$0xff]   ;;  %v1895_v23 = vld [vmem:[%s2215_s11 + $0xb4] ss:$8 sps:$4 sm:$0xff]  }
  0x1c   : > { %532 = vmatprep.mubr.bf16.mxu0 %v1912_v13  ;;  %v1897_v24 = vld [vmem:[%s2215_s11 + $0xb0] ss:$8 sps:$4 sm:$0xff]   ;;  %v1898_v25 = vld [vmem:[%s2215_s11 + $0xc4] ss:$8 sps:$4 sm:$0xff]   ;;  %v1900_v26 = vld [vmem:[%s2215_s11 + $0xc0] ss:$8 sps:$4 sm:$0xff]  }
  0x1d   : > { %505 = vmatpush1.bf16.msra.mxu0 %v1870_v5  ;;  %v1901_v27 = vld [vmem:[%s2215_s11 + $0xd4] ss:$8 sps:$4 sm:$0xff]   ;;  %v1903_v28 = vld [vmem:[%s2215_s11 + $0xd0] ss:$8 sps:$4 sm:$0xff]   ;;  %v1904_v29 = vld [vmem:[%s2215_s11 + $0xe4] ss:$8 sps:$4 sm:$0xff]  }
  0x1e   : > { %506 = vmatprep.subr.bf16.mxu0 %v1871_v6  ;;  %v1906_v30 = vld [vmem:[%s2215_s11 + $0xe0] ss:$8 sps:$4 sm:$0xff]   ;;  %v1907_v31 = vld [vmem:[%s2215_s11 + $0xf4] ss:$8 sps:$4 sm:$0xff]   ;;  %v1909_v32 = vld [vmem:[%s2215_s11 + $0xf0] ss:$8 sps:$4 sm:$0xff]  }
  0x1f   : > { %v1910_v33 = vld [vmem:[%s2234_s24] ss:$8 sps:$4 sm:$0xff]   ;;  %v1913_v34 = vld [vmem:[%s2234_s24 + $0x14] ss:$8 sps:$4 sm:$0xff]   ;;  %v1915_v35 = vld [vmem:[%s2234_s24 + $0x10] ss:$8 sps:$4 sm:$0xff]  }
  0x20   : > { %v1916_v36 = vld [vmem:[%s2234_s24 + $0x24] ss:$8 sps:$4 sm:$0xff]   ;;  %v1918_v37 = vld [vmem:[%s2234_s24 + $0x20] ss:$8 sps:$4 sm:$0xff]   ;;  %v1919_v38 = vld [vmem:[%s2234_s24 + $0x34] ss:$8 sps:$4 sm:$0xff]  }
  0x21   : > { %507 = vmatpush1.bf16.msra.mxu0 %v1873_v7  ;;  %v1921_v39 = vld [vmem:[%s2234_s24 + $0x30] ss:$8 sps:$4 sm:$0xff]   ;;  %v1922_v40 = vld [vmem:[%s2234_s24 + $0x44] ss:$8 sps:$4 sm:$0xff]   ;;  %v1924_v41 = vld [vmem:[%s2234_s24 + $0x40] ss:$8 sps:$4 sm:$0xff]  }
  0x22   : > { %508 = vmatprep.subr.bf16.mxu0 %v1874_v8  ;;  %v1925_v42 = vld [vmem:[%s2234_s24 + $0x54] ss:$8 sps:$4 sm:$0xff]   ;;  %v1927_v43 = vld [vmem:[%s2234_s24 + $0x50] ss:$8 sps:$4 sm:$0xff]   ;;  %v1928_v44 = vld [vmem:[%s2234_s24 + $0x64] ss:$8 sps:$4 sm:$0xff]  }
  0x23   : > { %v1930_v45 = vld [vmem:[%s2234_s24 + $0x60] ss:$8 sps:$4 sm:$0xff]   ;;  %v1931_v46 = vld [vmem:[%s2234_s24 + $0x74] ss:$8 sps:$4 sm:$0xff]   ;;  %v1933_v47 = vld [vmem:[%s2234_s24 + $0x70] ss:$8 sps:$4 sm:$0xff]  }
  0x24   : > { %p1645_p13 = scmp.ne.s32.totalorder %s2088_s18, 0 }
  0x25   : > { %509 = vmatpush1.bf16.msra.mxu0 %v1876_v9 }
  0x26   : > { %510 = vmatprep.subr.bf16.mxu0 %v1877_v10 }
  0x29   : > { %511 = vmatpush1.bf16.msra.mxu0 %v1879_v11 }
  0x2a   : > { %512 = vmatprep.subr.bf16.mxu0 %v1880_v12 }
  0x2d   : > { %513 = vmatpush1.bf16.msra.mxu0 %v1882_v14 }
  0x2e   : > { %514 = vmatprep.subr.bf16.mxu0 %v1883_v15 }
  0x31   : > { %515 = vmatpush1.bf16.msra.mxu0 %v1885_v16 }
  0x32   : > { %516 = vmatprep.subr.bf16.mxu0 %v1886_v17 }
  0x35   : > { %517 = vmatpush1.bf16.msra.mxu0 %v1888_v18 }
  0x36   : > { %518 = vmatprep.subr.bf16.mxu0 %v1889_v19 }
  0x39   : > { %519 = vmatpush1.bf16.msra.mxu0 %v1891_v20 }
  0x3a   : > { %520 = vmatprep.subr.bf16.mxu0 %v1892_v21 }
  0x3d   : > { %521 = vmatpush1.bf16.msra.mxu0 %v1894_v22 }
  0x3e   : > { %522 = vmatprep.subr.bf16.mxu0 %v1895_v23 }
  0x41   : > { %523 = vmatpush1.bf16.msra.mxu0 %v1897_v24 }
  0x42   : > { %524 = vmatprep.subr.bf16.mxu0 %v1898_v25 }
  0x45   : > { %525 = vmatpush1.bf16.msra.mxu0 %v1900_v26 }
  0x46   : > { %526 = vmatprep.subr.bf16.mxu0 %v1901_v27 }
  0x49   : > { %527 = vmatpush1.bf16.msra.mxu0 %v1903_v28 }
  0x4a   : > { %528 = vmatprep.subr.bf16.mxu0 %v1904_v29 }
  0x4d   : > { %529 = vmatpush1.bf16.msra.mxu0 %v1906_v30 }
  0x4e   : > { %530 = vmatprep.subr.bf16.mxu0 %v1907_v31 }
  0x51   : > { %531 = vmatpush1.bf16.msra.mxu0 %v1909_v32 }
  0x54   : > { %533 = vmatmul.mubr.bf16.vlgmr.msra.gmra.mrb[0].mxu0 %v1910_v33 }
  0x55   : > { %542 = vmatprep.mubr.bf16.mxu0 %v1913_v34 }
  0x5c   : > { %543 = vmatmul.mubr.bf16.gmra.mrb[4].mxu0 %v1915_v35 }
  0x5d   : > { %552 = vmatprep.mubr.bf16.mxu0 %v1916_v36 }
  0x64   : > { %553 = vmatmul.mubr.bf16.gmra.mrb[8].mxu0 %v1918_v37 }
  0x65   : > { %562 = vmatprep.mubr.bf16.mxu0 %v1919_v38 }
  0x6c   : > { %563 = vmatmul.mubr.bf16.gmra.mrb[12].mxu0 %v1921_v39 }
  0x6d   : > { %572 = vmatprep.mubr.bf16.mxu0 %v1922_v40 }
  0x74   : > { %573 = vmatmul.mubr.bf16.gmra.mrb[16].mxu0 %v1924_v41 }
  0x75   : > { %582 = vmatprep.mubr.bf16.mxu0 %v1925_v42 }
  0x7c   : > { %583 = vmatmul.mubr.bf16.gmra.mrb[20].mxu0 %v1927_v43 }
  0x7d   : > { %592 = vmatprep.mubr.bf16.mxu0 %v1928_v44 }
  0x84   : > { %593 = vmatmul.mubr.bf16.gmra.mrb[24].mxu0 %v1930_v45 }
  0x85   : > { %602 = vmatprep.mubr.bf16.mxu0 %v1931_v46 }
  0x8c   : > { %603 = vmatmul.mubr.bf16.gmra.mrb[28].mxu0 %v1933_v47 }
 0x127   : > { %v534_v48 = vpop.f32.mrb[0].mxu0 }
 0x128   : > { %v536_v49 = vpop.f32.mrb[1].mxu0 }
 0x129   : > { %v538_v50 = vpop.f32.mrb[2].mxu0 }
 0x12a   : > { %v613_v51 = vpack.c.bf16 %v538_v50, %v534_v48  ;;  %v540_v52 = vpop.f32.mrb[3].mxu0 }
 0x12b   : > { %v2272_v53 = vpack.c.bf16 %v540_v52, %v536_v49 }
 0x12c   : > { %637 = vrot.lane.b32.xlu0 %v613_v51, %s2106_s29  ;;  %1722 = vmatprep.mubr.msk.bf16.mxu1 %vm653_vm0, %v613_v51 }
 0x12f   : > { %v544_v54 = vpop.f32.mrb[4].mxu0 }
 0x130   : > { %v546_v55 = vpop.f32.mrb[5].mxu0 }
 0x131   : > { %v548_v56 = vpop.f32.mrb[6].mxu0 }
 0x132   : > { %v2276_v57 = vpack.c.bf16 %v548_v56, %v544_v54  ;;  %v550_v58 = vpop.f32.mrb[7].mxu0 }
 0x133   : > { %v2278_v59 = vpack.c.bf16 %v550_v58, %v546_v55 }
 0x134   : > { %639 = vrot.lane.b32.xlu0 %v2276_v57, %s2106_s29 }
 0x137   : > { %v554_v60 = vpop.f32.mrb[8].mxu0 }
 0x138   : > { %v556_v61 = vpop.f32.mrb[9].mxu0 }
 0x139   : > { %v558_v62 = vpop.f32.mrb[10].mxu0 }
 0x13a   : > { %v2282_v63 = vpack.c.bf16 %v558_v62, %v554_v60  ;;  %v560_v0 = vpop.f32.mrb[11].mxu0 }
 0x13b   : > { %v2284_v1 = vpack.c.bf16 %v560_v0, %v556_v61 }
 0x13c   : > { %641 = vrot.lane.b32.xlu1 %v2282_v63, %s2106_s29 }
 0x13f   : > { %v564_v2 = vpop.f32.mrb[12].mxu0 }
 0x140   : > { %v566_v3 = vpop.f32.mrb[13].mxu0 }
 0x141   : > { %v568_v4 = vpop.f32.mrb[14].mxu0 }
 0x142   : > { %v2288_v5 = vpack.c.bf16 %v568_v4, %v564_v2  ;;  %v570_v6 = vpop.f32.mrb[15].mxu0 }
 0x143   : > { %v2290_v7 = vpack.c.bf16 %v570_v6, %v566_v3 }
 0x144   : > { %643 = vrot.lane.b32.xlu1 %v2288_v5, %s2106_s29 }
 0x147   : > { %v574_v8 = vpop.f32.mrb[16].mxu0 }
 0x148   : > { %v576_v9 = vpop.f32.mrb[17].mxu0 }
 0x149   : > { %v578_v10 = vpop.f32.mrb[18].mxu0 }
 0x14a   : > { %v2294_v11 = vpack.c.bf16 %v578_v10, %v574_v8  ;;  %v580_v12 = vpop.f32.mrb[19].mxu0 }
 0x14b   : > { %v2296_v13 = vpack.c.bf16 %v580_v12, %v576_v9 }
 0x14c   : > { %645 = vrot.lane.b32.xlu0 %v2294_v11, %s2106_s29 }
 0x14f   : > { %v584_v14 = vpop.f32.mrb[20].mxu0 }
 0x150   : > { %v586_v15 = vpop.f32.mrb[21].mxu0 }
 0x151   : > { %v588_v16 = vpop.f32.mrb[22].mxu0 }
 0x152   : > { %v2300_v17 = vpack.c.bf16 %v588_v16, %v584_v14  ;;  %v590_v18 = vpop.f32.mrb[23].mxu0 }
 0x153   : > { %v2302_v19 = vpack.c.bf16 %v590_v18, %v586_v15 }
 0x154   : > { %647 = vrot.lane.b32.xlu1 %v2300_v17, %s2106_s29 }
 0x157   : > { %v594_v20 = vpop.f32.mrb[24].mxu0 }
 0x158   : > { %v596_v21 = vpop.f32.mrb[25].mxu0 }
 0x159   : > { %v598_v22 = vpop.f32.mrb[26].mxu0 }
 0x15a   : > { %v619_v23 = vpack.c.bf16 %v598_v22, %v594_v20  ;;  %v600_v24 = vpop.f32.mrb[27].mxu0 }
 0x15b   : > { %v627_v25 = vpack.c.bf16 %v600_v24, %v596_v21 }
 0x15c   : > { %649 = vrot.lane.b32.xlu0 %v619_v23, %s2106_s29 }
 0x15f   : > { %v604_v26 = vpop.f32.mrb[28].mxu0 }
 0x160   : > { %v606_v27 = vpop.f32.mrb[29].mxu0 }
 0x161   : > { %v608_v28 = vpop.f32.mrb[30].mxu0 }
 0x162   : > { %v620_v29 = vpack.c.bf16 %v608_v28, %v604_v26  ;;  %v610_v30 = vpop.f32.mrb[31].mxu0 }
 0x163   : > { %v628_v31 = vpack.c.bf16 %v610_v30, %v606_v27 }
 0x164   : > { %651 = vrot.lane.b32.xlu1 %v620_v29, %s2106_s29 }
 0x19e   : > { %v638_v32 = vpop.permute.xlu0 %637 }
 0x19f   : > { %1778 = vmatprep.subr.msk.bf16.mxu1 %vm653_vm0, %v638_v32  ;;  %v679_v33 = vsel %vm653_vm0, %v638_v32, 0 }
 0x1a0   : > { %1707 = vmatpush3.bf16.xpose.msra.mxu1 %v679_v33 }
 0x1a6   : > { %v640_v34 = vpop.permute.xlu0 %639 }
 0x1a7   : > { %1779 = vmatprep.subr.msk.bf16.mxu1 %vm653_vm0, %v640_v34  ;;  %v682_v35 = vsel %vm653_vm0, %v640_v34, 0 }
 0x1a8   : > { %1709 = vmatpush3.bf16.xpose.msra.mxu1 %v682_v35 }
 0x1ae   : > { %v642_v36 = vpop.permute.xlu1 %641 }
 0x1af   : > { %1780 = vmatprep.subr.msk.bf16.mxu1 %vm653_vm0, %v642_v36  ;;  %v685_v37 = vsel %vm653_vm0, %v642_v36, 0 }
 0x1b0   : > { %1711 = vmatpush3.bf16.xpose.msra.mxu1 %v685_v37 }
 0x1b6   : > { %v644_v38 = vpop.permute.xlu1 %643 }
 0x1b7   : > { %1781 = vmatprep.subr.msk.bf16.mxu1 %vm653_vm0, %v644_v38  ;;  %v688_v39 = vsel %vm653_vm0, %v644_v38, 0 }
 0x1b8   : > { %1713 = vmatpush3.bf16.xpose.msra.mxu1 %v688_v39 }
 0x1be   : > { %v646_v40 = vpop.permute.xlu0 %645 }
 0x1bf   : > { %1782 = vmatprep.subr.msk.bf16.mxu1 %vm653_vm0, %v646_v40  ;;  %v691_v41 = vsel %vm653_vm0, %v646_v40, 0 }
 0x1c0   : > { %1715 = vmatpush3.bf16.xpose.msra.mxu1 %v691_v41 }
 0x1c6   : > { %v648_v42 = vpop.permute.xlu1 %647 }
 0x1c7   : > { %1783 = vmatprep.subr.msk.bf16.mxu1 %vm653_vm0, %v648_v42  ;;  %v694_v43 = vsel %vm653_vm0, %v648_v42, 0 }
 0x1c8   : > { %1717 = vmatpush3.bf16.xpose.msra.mxu1 %v694_v43 }
 0x1ce   : > { %v650_v44 = vpop.permute.xlu0 %649 }
 0x1cf   : > { %1784 = vmatprep.subr.msk.bf16.mxu1 %vm653_vm0, %v650_v44  ;;  %v697_v45 = vsel %vm653_vm0, %v650_v44, 0 }
 0x1d0   : > { %1719 = vmatpush3.bf16.xpose.msra.mxu1 %v697_v45 }
 0x1d6   : > { %v652_v46 = vpop.permute.xlu1 %651 }
 0x1d7   : > { %1785 = vmatprep.subr.msk.bf16.mxu1 %vm653_vm0, %v652_v46  ;;  %v700_v47 = vsel %vm653_vm0, %v652_v46, 0 }
 0x1d8   : > { %1721 = vmatpush3.bf16.xpose.msra.mxu1 %v700_v47 }
 0x1d9   : > { %1738 = vmatprep.subr.bf16.mxu1 %v2272_v53 }
 0x1df   : > { %1723 = vmatmul.mubr.msk.bf16.vlgmr.msra.gmra.mrb[0].mxu1 %vm653_vm0, %v2276_v57 }
 0x1e0   : > { %1726 = vmatprep.mubr.msk.bf16.mxu1 %vm653_vm0, %v2282_v63  ;;  %1739 = vmatpush3.bf16.msra.mxu1 %v2272_v53 }
 0x1e1   : > { %1740 = vmatprep.subr.bf16.mxu1 %v2278_v59 }
 0x1e4   : > { %1741 = vmatpush3.bf16.msra.mxu1 %v2278_v59 }
 0x1e5   : > { %1742 = vmatprep.subr.bf16.mxu1 %v2284_v1 }
 0x1e7   : > { %1727 = vmatmul.mubr.msk.bf16.gmra.mrb[4].mxu1 %vm653_vm0, %v2288_v5 }
 0x1e8   : > { %1730 = vmatprep.mubr.msk.bf16.mxu1 %vm653_vm0, %v2294_v11  ;;  %1743 = vmatpush3.bf16.msra.mxu1 %v2284_v1 }
 0x1e9   : > { %1744 = vmatprep.subr.bf16.mxu1 %v2290_v7 }
 0x1ec   : > { %1745 = vmatpush3.bf16.msra.mxu1 %v2290_v7 }
 0x1ed   : > { %1746 = vmatprep.subr.bf16.mxu1 %v2296_v13 }
 0x1ef   : > { %1731 = vmatmul.mubr.msk.bf16.gmra.mrb[8].mxu1 %vm653_vm0, %v2300_v17 }
 0x1f0   : > { %1734 = vmatprep.mubr.msk.bf16.mxu1 %vm653_vm0, %v619_v23  ;;  %1747 = vmatpush3.bf16.msra.mxu1 %v2296_v13 }
 0x1f1   : > { %1748 = vmatprep.subr.bf16.mxu1 %v2302_v19 }
 0x1f4   : > { %1749 = vmatpush3.bf16.msra.mxu1 %v2302_v19 }
 0x1f5   : > { %1750 = vmatprep.subr.bf16.mxu1 %v627_v25 }
 0x1f7   : > { %1735 = vmatmul.mubr.msk.bf16.gmra.mrb[12].mxu1 %vm653_vm0, %v620_v29 }
 0x1f8   : > { %1751 = vmatpush3.bf16.msra.mxu1 %v627_v25 }
 0x1f9   : > { %1752 = vmatprep.subr.bf16.mxu1 %v628_v31 }
 0x1fc   : > { %1753 = vmatpush3.bf16.msra.mxu1 %v628_v31 }
 0x2b2   : > { %v1724_v48 = vpop.f32.mrb[0].mxu1 }
 0x2b3   : > { %v736_v49 = vpop.f32.mrb[1].mxu1 }
 0x2b4   : > { %799 = vmax.xlane.f32.xlu0 %v736_v49  ;;  %v1725_v50 = vpop.f32.mrb[2].mxu1 }
 0x2b5   : > { %v739_v51 = vpop.f32.mrb[3].mxu1 }
 0x2b6   : > { %801 = vmax.xlane.f32.xlu1 %v739_v51 }
 0x2b8   : > { %803 = vmax.xlane.f32.xlu0 %v1724_v48 }
 0x2ba   : > { %v1728_v52 = vpop.f32.mrb[4].mxu1 }
 0x2bb   : > { %v752_v53 = vpop.f32.mrb[5].mxu1 }
 0x2bc   : > { %805 = vmax.xlane.f32.xlu0 %v1725_v50  ;;  %807 = vmax.xlane.f32.xlu1 %v752_v53  ;;  %v1729_v54 = vpop.f32.mrb[6].mxu1 }
 0x2bd   : > { %v755_v55 = vpop.f32.mrb[7].mxu1 }
 0x2c0   : > { %811 = vmax.xlane.f32.xlu1 %v1728_v52  ;;  %809 = vmax.xlane.f32.xlu0 %v755_v55 }
 0x2c2   : > { %v2348_v56 = vpop.f32.mrb[8].mxu1 }
 0x2c3   : > { %v768_v57 = vpop.f32.mrb[9].mxu1 }
 0x2c4   : > { %813 = vmax.xlane.f32.xlu0 %v1729_v54  ;;  %815 = vmax.xlane.f32.xlu1 %v768_v57  ;;  %v2350_v58 = vpop.f32.mrb[10].mxu1 }
 0x2c5   : > { %v771_v59 = vpop.f32.mrb[11].mxu1 }
 0x2c8   : > { %819 = vmax.xlane.f32.xlu1 %v2348_v56  ;;  %817 = vmax.xlane.f32.xlu0 %v771_v59 }
 0x2ca   : > { %v2353_v60 = vpop.f32.mrb[12].mxu1 }
 0x2cb   : > { %v2355_v61 = vpop.f32.mrb[13].mxu1 }
 0x2cc   : > { %821 = vmax.xlane.f32.xlu0 %v2350_v58  ;;  %823 = vmax.xlane.f32.xlu1 %v2355_v61  ;;  %v2359_v62 = vpop.f32.mrb[14].mxu1 }
 0x2cd   : > { %v2361_v63 = vpop.f32.mrb[15].mxu1 }
 0x2d0   : > { %827 = vmax.xlane.f32.xlu1 %v2353_v60  ;;  %825 = vmax.xlane.f32.xlu0 %v2361_v63 }
 0x2d4   : > { %829 = vmax.xlane.f32.xlu0 %v2359_v62 }
 0x341   : > { %v800_v0 = vpop.xlane.xlu0 %799 }
 0x342   : > { %v831_v1 = vsub.f32 %v736_v49, %v800_v0 }
 0x343   : > { %v802_v2 = vpop.xlane.xlu1 %801 }
 0x344   : > { %v847_v3 = vmul.f32 1.442695, %v831_v1  ;;  %v832_v4 = vsub.f32 %v739_v51, %v802_v2 }
 0x345   : > { %v804_v5 = vpop.xlane.xlu0 %803 }
 0x346   : > { %1934 = vpow2.f32 %v847_v3  ;;  %v849_v6 = vmul.f32 1.442695, %v832_v4  ;;  %v833_v7 = vsub.f32 %v1724_v48, %v804_v5 }
 0x348   : > { %1936 = vpow2.f32 %v849_v6  ;;  %v851_v8 = vmul.f32 1.442695, %v833_v7 }
 0x349   : > { %v806_v9 = vpop.xlane.xlu0 %805  ;;  %v808_v10 = vpop.xlane.xlu1 %807 }
 0x34a   : > { %1938 = vpow2.f32 %v851_v8  ;;  %v834_v11 = vsub.f32 %v1725_v50, %v806_v9  ;;  %v835_v12 = vsub.f32 %v752_v53, %v808_v10 }
 0x34c   : > { %v853_v13 = vmul.f32 1.442695, %v834_v11  ;;  %v855_v14 = vmul.f32 1.442695, %v835_v12 }
 0x34d   : > { %v812_v15 = vpop.xlane.xlu1 %811  ;;  %v810_v16 = vpop.xlane.xlu0 %809 }
 0x34e   : > { %1940 = vpow2.f32 %v853_v13  ;;  %v837_v17 = vsub.f32 %v1728_v52, %v812_v15  ;;  %v836_v18 = vsub.f32 %v755_v55, %v810_v16 }
 0x34f   : > { %1942 = vpow2.f32 %v855_v14 }
 0x350   : > { %v2366_v19 = vpop.eup %1934  ;;  %v859_v20 = vmul.f32 1.442695, %v837_v17  ;;  %v857_v21 = vmul.f32 1.442695, %v836_v18 }
 0x351   : > { %v814_v22 = vpop.xlane.xlu0 %813  ;;  %v816_v23 = vpop.xlane.xlu1 %815  ;;  %879 = vadd.xlane.f32.xlu1 %v2366_v19 }
 0x352   : > { %v2369_v24 = vpop.eup %1936  ;;  %1944 = vpow2.f32 %v859_v20  ;;  %v838_v25 = vsub.f32 %v1729_v54, %v814_v22  ;;  %v839_v26 = vsub.f32 %v768_v57, %v816_v23 }
 0x353   : > { %1946 = vpow2.f32 %v857_v21  ;;  %881 = vadd.xlane.f32.xlu0 %v2369_v24 }
 0x354   : > { %v2372_v27 = vpop.eup %1938  ;;  %v861_v28 = vmul.f32 1.442695, %v838_v25  ;;  %v863_v29 = vmul.f32 1.442695, %v839_v26 }
 0x355   : > { %v820_v30 = vpop.xlane.xlu1 %819  ;;  %v818_v31 = vpop.xlane.xlu0 %817  ;;  %883 = vadd.xlane.f32.xlu1 %v2372_v27 }
 0x356   : > { %1948 = vpow2.f32 %v861_v28  ;;  %v841_v32 = vsub.f32 %v2348_v56, %v820_v30  ;;  %v840_v33 = vsub.f32 %v771_v59, %v818_v31 }
 0x357   : > { %1950 = vpow2.f32 %v863_v29 }
 0x358   : > { %v2376_v34 = vpop.eup %1940  ;;  %v867_v35 = vmul.f32 1.442695, %v841_v32  ;;  %v865_v36 = vmul.f32 1.442695, %v840_v33 }
 0x359   : > { %v2378_v37 = vpop.eup %1942  ;;  %v822_v38 = vpop.xlane.xlu0 %821  ;;  %885 = vadd.xlane.f32.xlu0 %v2376_v34 }
 0x35a   : > { %v824_v39 = vpop.xlane.xlu1 %823  ;;  %1952 = vpow2.f32 %v867_v35  ;;  %v842_v40 = vsub.f32 %v2350_v58, %v822_v38  ;;  %887 = vadd.xlane.f32.xlu1 %v2378_v37 }
 0x35b   : > { %v843_v41 = vsub.f32 %v2355_v61, %v824_v39  ;;  %1954 = vpow2.f32 %v865_v36 }
 0x35c   : > { %v2384_v42 = vpop.eup %1944  ;;  %v869_v43 = vmul.f32 1.442695, %v842_v40 }
 0x35d   : > { %v871_v44 = vmul.f32 1.442695, %v843_v41  ;;  %v2386_v45 = vpop.eup %1946  ;;  %v826_v47 = vpop.xlane.xlu0 %825 }
 0x35e   : > { %v828_v46 = vpop.xlane.xlu1 %827  ;;  %1956 = vpow2.f32 %v869_v43  ;;  %891 = vadd.xlane.f32.xlu1 %v2384_v42  ;;  %889 = vadd.xlane.f32.xlu0 %v2386_v45  ;;  %v844_v49 = vsub.f32 %v2361_v63, %v826_v47 }
 0x35f   : > { %v845_v48 = vsub.f32 %v2353_v60, %v828_v46  ;;  %1958 = vpow2.f32 %v871_v44 }
 0x360   : > { %v2392_v50 = vpop.eup %1948  ;;  %v873_v52 = vmul.f32 1.442695, %v844_v49 }
 0x361   : > { %v875_v51 = vmul.f32 1.442695, %v845_v48  ;;  %v2394_v53 = vpop.eup %1950  ;;  %v830_v54 = vpop.xlane.xlu0 %829 }
 0x362   : > { %895 = vadd.xlane.f32.xlu1 %v2394_v53  ;;  %893 = vadd.xlane.f32.xlu0 %v2392_v50  ;;  %v846_v55 = vsub.f32 %v2359_v62, %v830_v54 }
 0x363   : > { %1960 = vpow2.f32 %v875_v51 }
 0x364   : > { %1962 = vpow2.f32 %v873_v52  ;;  %v2399_v56 = vpop.eup %1952  ;;  %v877_v57 = vmul.f32 1.442695, %v846_v55 }
 0x365   : > { %v2401_v58 = vpop.eup %1954 }
 0x366   : > { %1964 = vpow2.f32 %v877_v57  ;;  %899 = vadd.xlane.f32.xlu1 %v2399_v56  ;;  %897 = vadd.xlane.f32.xlu0 %v2401_v58 }
 0x368   : > { %v2405_v59 = vpop.eup %1956 }
 0x369   : > { %v2407_v60 = vpop.eup %1958 }
 0x36a   : > { %903 = vadd.xlane.f32.xlu1 %v2407_v60  ;;  %901 = vadd.xlane.f32.xlu0 %v2405_v59 }
 0x36d   : > { %v2411_v61 = vpop.eup %1960 }
 0x36e   : > { %v2413_v62 = vpop.eup %1962  ;;  %907 = vadd.xlane.f32.xlu1 %v2411_v61 }
 0x36f   : > { %905 = vadd.xlane.f32.xlu0 %v2413_v62 }
 0x370   : > { %v2417_v63 = vpop.eup %1964 }
 0x373   : > { %909 = vadd.xlane.f32.xlu0 %v2417_v63 }
 0x3de   : > { %v880_v0 = vpop.xlane.xlu1 %879 }
 0x3df   : > { %1966 = vrcp.f32 %v880_v0 }
 0x3e0   : > { %v882_v1 = vpop.xlane.xlu0 %881 }
 0x3e1   : > { %1968 = vrcp.f32 %v882_v1 }
 0x3e2   : > { %v884_v2 = vpop.xlane.xlu1 %883 }
 0x3e3   : > { %1970 = vrcp.f32 %v884_v2 }
 0x3e6   : > { %v886_v3 = vpop.xlane.xlu0 %885 }
 0x3e7   : > { %v888_v4 = vpop.xlane.xlu1 %887  ;;  %1972 = vrcp.f32 %v886_v3 }
 0x3e8   : > { %1974 = vrcp.f32 %v888_v4 }
 0x3e9   : > { %v1967_v5 = vpop.eup %1966 }
 0x3ea   : > { %v927_v9 = vmul.f32 %v1967_v5, %v2366_v19 }
 0x3eb   : > { %v1969_v6 = vpop.eup %1968  ;;  %v892_v7 = vpop.xlane.xlu1 %891 }
 0x3ec   : > { %v890_v8 = vpop.xlane.xlu0 %889  ;;  %v928_v10 = vmul.f32 %v1969_v6, %v2369_v24 }
 0x3ed   : > { %1976 = vrcp.f32 %v890_v8  ;;  %v1971_v12 = vpop.eup %1970  ;;  %v2107_v8 = vmov (!%p1645_p13), 0.0  }
 0x3ee   : > { %v943_v11 = vpack.c.bf16 %v928_v10, %v927_v9  ;;  %1978 = vrcp.f32 %v892_v7  ;;  %v929_v16 = vmul.f32 %v1971_v12, %v2372_v27  ;;  %1052 = vst [vmem:[#allocation2] sm:$0xff] (!%p1645_p13), %v2107_v8  ;;  %1053 = vst [vmem:[#allocation2 + $0x8] sm:$0xff] (!%p1645_p13), %v2107_v8 }
 0x3ef   : > { %v896_v13 = vpop.xlane.xlu1 %895  ;;  %1054 = vst [vmem:[#allocation2 + $0x10] sm:$0xff] (!%p1645_p13), %v2107_v8  ;;  %1055 = vst [vmem:[#allocation2 + $0x18] sm:$0xff] (!%p1645_p13), %v2107_v8 }
 0x3f0   : > { %v894_v14 = vpop.xlane.xlu0 %893  ;;  %1754 = vmatprep.mubr.bf16.mxu1 %v943_v11  ;;  %1056 = vst [vmem:[#allocation2 + $0x20] sm:$0xff] (!%p1645_p13), %v2107_v8  ;;  %1057 = vst [vmem:[#allocation2 + $0x28] sm:$0xff] (!%p1645_p13), %v2107_v8 }
 0x3f1   : > { %v1973_v15 = vpop.eup %1972  ;;  %1980 = vrcp.f32 %v894_v14  ;;  %1058 = vst [vmem:[#allocation2 + $0x30] sm:$0xff] (!%p1645_p13), %v2107_v8  ;;  %1059 = vst [vmem:[#allocation2 + $0x38] sm:$0xff] (!%p1645_p13), %v2107_v8 }
 0x3f2   : > { %v930_v17 = vmul.f32 %v1973_v15, %v2376_v34  ;;  %1982 = vrcp.f32 %v896_v13  ;;  %v1975_v19 = vpop.eup %1974  ;;  %1060 = vst [vmem:[#allocation2 + $0x40] sm:$0xff] (!%p1645_p13), %v2107_v8  ;;  %1061 = vst [vmem:[#allocation2 + $0x48] sm:$0xff] (!%p1645_p13), %v2107_v8 }
 0x3f3   : > { %v900_v18 = vpop.xlane.xlu1 %899  ;;  %v931_v25 = vmul.f32 %v1975_v19, %v2378_v37  ;;  %1062 = vst [vmem:[#allocation2 + $0x50] sm:$0xff] (!%p1645_p13), %v2107_v8  ;;  %1063 = vst [vmem:[#allocation2 + $0x58] sm:$0xff] (!%p1645_p13), %v2107_v8 }
 0x3f4   : > { %v898_v20 = vpop.xlane.xlu0 %897  ;;  %v944_v21 = vpack.c.bf16 %v930_v17, %v929_v16  ;;  %1064 = vst [vmem:[#allocation2 + $0x60] sm:$0xff] (!%p1645_p13), %v2107_v8  ;;  %1065 = vst [vmem:[#allocation2 + $0x68] sm:$0xff] (!%p1645_p13), %v2107_v8 }
 0x3f5   : > { %1984 = vrcp.f32 %v898_v20  ;;  %1066 = vst [vmem:[#allocation2 + $0x70] sm:$0xff] (!%p1645_p13), %v2107_v8  ;;  %1067 = vst [vmem:[#allocation2 + $0x78] sm:$0xff] (!%p1645_p13), %v2107_v8 }
 0x3f6   : > { %1755 = vmatmul.mubr.bf16.vlgmr.msra.gmra.mrb[16].mxu1 %v944_v21  ;;  %1986 = vrcp.f32 %v900_v18  ;;  %1068 = vst [vmem:[#allocation2 + $0x80] sm:$0xff] (!%p1645_p13), %v2107_v8  ;;  %1069 = vst [vmem:[#allocation2 + $0x88] sm:$0xff] (!%p1645_p13), %v2107_v8 }
 0x3f7   : > { %v1977_v22 = vpop.eup %1976  ;;  %v904_v23 = vpop.xlane.xlu1 %903  ;;  %1070 = vst [vmem:[#allocation2 + $0x90] sm:$0xff] (!%p1645_p13), %v2107_v8  ;;  %1071 = vst [vmem:[#allocation2 + $0x98] sm:$0xff] (!%p1645_p13), %v2107_v8 }
 0x3f8   : > { %v902_v24 = vpop.xlane.xlu0 %901  ;;  %v932_v26 = vmul.f32 %v1977_v22, %v2386_v45  ;;  %v1979_v28 = vpop.eup %1978  ;;  %1072 = vst [vmem:[#allocation2 + $0xa0] sm:$0xff] (!%p1645_p13), %v2107_v8  ;;  %1073 = vst [vmem:[#allocation2 + $0xa8] sm:$0xff] (!%p1645_p13), %v2107_v8 }
 0x3f9   : > { %1988 = vrcp.f32 %v902_v24  ;;  %v933_v32 = vmul.f32 %v1979_v28, %v2384_v42  ;;  %1074 = vst [vmem:[#allocation2 + $0xb0] sm:$0xff] (!%p1645_p13), %v2107_v8  ;;  %1075 = vst [vmem:[#allocation2 + $0xb8] sm:$0xff] (!%p1645_p13), %v2107_v8 }
 0x3fa   : > { %v945_v27 = vpack.c.bf16 %v932_v26, %v931_v25  ;;  %1990 = vrcp.f32 %v904_v23  ;;  %1076 = vst [vmem:[#allocation2 + $0xc0] sm:$0xff] (!%p1645_p13), %v2107_v8  ;;  %1077 = vst [vmem:[#allocation2 + $0xc8] sm:$0xff] (!%p1645_p13), %v2107_v8 }
 0x3fb   : > { %v1981_v29 = vpop.eup %1980  ;;  %v908_v30 = vpop.xlane.xlu1 %907  ;;  %1078 = vst [vmem:[#allocation2 + $0xd0] sm:$0xff] (!%p1645_p13), %v2107_v8  ;;  %1079 = vst [vmem:[#allocation2 + $0xd8] sm:$0xff] (!%p1645_p13), %v2107_v8 }
 0x3fc   : > { %v906_v31 = vpop.xlane.xlu0 %905  ;;  %1758 = vmatprep.mubr.bf16.mxu1 %v945_v27  ;;  %v934_v33 = vmul.f32 %v1981_v29, %v2392_v50  ;;  %v1983_v34 = vpop.eup %1982  ;;  %1080 = vst [vmem:[#allocation2 + $0xe0] sm:$0xff] (!%p1645_p13), %v2107_v8  ;;  %1081 = vst [vmem:[#allocation2 + $0xe8] sm:$0xff] (!%p1645_p13), %v2107_v8 }
 0x3fd   : > { %1992 = vrcp.f32 %v906_v31  ;;  %v935_v38 = vmul.f32 %v1983_v34, %v2394_v53  ;;  %1082 = vst [vmem:[#allocation2 + $0xf0] sm:$0xff] (!%p1645_p13), %v2107_v8  ;;  %1083 = vst [vmem:[#allocation2 + $0xf8] sm:$0xff] (!%p1645_p13), %v2107_v8 }
 0x3fe   : > { %1994 = vrcp.f32 %v908_v30  ;;  %v946_v35 = vpack.c.bf16 %v934_v33, %v933_v32 }
 0x3ff   : > { %v1985_v36 = vpop.eup %1984 }
 0x400   : > { %v910_v37 = vpop.xlane.xlu0 %909  ;;  %1759 = vmatmul.mubr.bf16.gmra.mrb[20].mxu1 %v946_v35  ;;  %v936_v39 = vmul.f32 %v1985_v36, %v2401_v58  ;;  %v1987_v40 = vpop.eup %1986 }
 0x401   : > { %1996 = vrcp.f32 %v910_v37  ;;  %v937_v42 = vmul.f32 %v1987_v40, %v2399_v56 }
 0x402   : > { %v947_v41 = vpack.c.bf16 %v936_v39, %v935_v38 }
 0x403   : > { %v1989_v43 = vpop.eup %1988 }
 0x404   : > { %1762 = vmatprep.mubr.bf16.mxu1 %v947_v41  ;;  %v938_v44 = vmul.f32 %v1989_v43, %v2405_v59  ;;  %v1991_v45 = vpop.eup %1990 }
 0x405   : > { %v939_v49 = vmul.f32 %v1991_v45, %v2407_v60 }
 0x406   : > { %v948_v46 = vpack.c.bf16 %v938_v44, %v937_v42 }
 0x407   : > { %v1993_v47 = vpop.eup %1992 }
 0x408   : > { %v1995_v48 = vpop.eup %1994  ;;  %1763 = vmatmul.mubr.bf16.gmra.mrb[24].mxu1 %v948_v46  ;;  %v940_v50 = vmul.f32 %v1993_v47, %v2413_v62 }
 0x409   : > { %v941_v53 = vmul.f32 %v1995_v48, %v2411_v61 }
 0x40a   : > { %v949_v52 = vpack.c.bf16 %v940_v50, %v939_v49 }
 0x40b   : > { %v1997_v51 = vpop.eup %1996 }
 0x40c   : > { %v942_v54 = vmul.f32 %v1997_v51, %v2417_v63  ;;  %1766 = vmatprep.mubr.bf16.mxu1 %v949_v52 }
 0x40e   : > { %v950_v55 = vpack.c.bf16 %v942_v54, %v941_v53 }
 0x410   : > { %1767 = vmatmul.mubr.bf16.gmra.mrb[28].mxu1 %v950_v55 }
 0x4c9   : > { %v2436_v56 = vpop.f32.mrb[16].mxu1 }
 0x4ca   : > { %v2438_v57 = vpop.f32.mrb[17].mxu1 }
 0x4cb   : > { %v2440_v58 = vpop.f32.mrb[18].mxu1 }
 0x4cc   : > { %v2442_v59 = vpop.f32.mrb[19].mxu1 }
 0x4d3   : > { %v2444_v60 = vpop.f32.mrb[20].mxu1 }
 0x4d4   : > { %v2446_v62 = vpop.f32.mrb[21].mxu1 }
 0x4d5   : > { %v2448_v0 = vpop.f32.mrb[22].mxu1 }
 0x4d6   : > { %v2450_v61 = vpop.f32.mrb[23].mxu1 }
 0x4db   : > { %v2452_v63 = vpop.f32.mrb[24].mxu1 }
 0x4dc   : > { %v2454_v1 = vpop.f32.mrb[25].mxu1 }
 0x4dd   : > { %v2456_v2 = vpop.f32.mrb[26].mxu1 }
 0x4de   : > { %v2458_v3 = vpop.f32.mrb[27].mxu1 }
 0x4e0   : > { %1051 = sbr.rel (%p1645_p13) target bundleno = 1255 (0x4e7), region = 40 }
 0x4e3   : > { %v2460_v4 = vpop.f32.mrb[28].mxu1 }
 0x4e4   : > { %v2462_v5 = vpop.f32.mrb[29].mxu1 }
 0x4e5   : > { %v2464_v6 = vpop.f32.mrb[30].mxu1 }
 0x4e6   : > { %v2466_v7 = vpop.f32.mrb[31].mxu1 }
 0x4e7 PF: > { %s1672_s7 = sshll.u32 %s2088_s18, 6  ;;  %v2108_v9 = vmov 0   ;;  %v1116_v18 = vpack.c.bf16 %v2442_v59, %v2438_v57  ;;  %v1120_v20 = vpack.c.bf16 %v2458_v3, %v2454_v1  ;;  %v1117_v21 = vpack.c.bf16 %v2440_v58, %v2436_v56  ;;  %v1084_v26 = vld [vmem:[#allocation2] sm:$0xff]  ;;  %v1085_v27 = vld [vmem:[#allocation2 + $0x8] sm:$0xff]  ;;  %v1086_v32 = vld [vmem:[#allocation2 + $0x10] sm:$0xff]  ;;  %p1664_p0 = scmp.ne.s32.totalorder %s2088_s18, 3 }
 0x4e8   : > { %s1126_s10 = scalar_lea.vmem %s2637_s2, %s1672_s7  ;;  %1231 = vmatprep.mubr.bf16.mxu0 %v2108_v9  ;;  %1271 = vmatprep.mubr.bf16.mxu1 %v2108_v9  ;;  %v1121_v19 = vpack.c.bf16 %v2456_v2, %v2452_v63  ;;  %v1118_v22 = vpack.c.bf16 %v2450_v61, %v2446_v62  ;;  %v1122_v23 = vpack.c.bf16 %v2466_v7, %v2462_v5  ;;  %v1100_v28 = vld [vmem:[#allocation2 + $0x80] sm:$0xff]  ;;  %v1101_v29 = vld [vmem:[#allocation2 + $0x88] sm:$0xff]  ;;  %v1102_v33 = vld [vmem:[#allocation2 + $0x90] sm:$0xff] }
 0x4e9   : > { %v1998_v10 = vld [vmem:[%s1126_s10 + $0x4] ss:$8 sps:$4 sm:$0xff]   ;;  %v2000_v11 = vld [vmem:[%s1126_s10] ss:$8 sps:$4 sm:$0xff]   ;;  %v2001_v12 = vld [vmem:[%s1126_s10 + $0x14] ss:$8 sps:$4 sm:$0xff]   ;;  %v1119_v24 = vpack.c.bf16 %v2448_v0, %v2444_v60  ;;  %v1123_v25 = vpack.c.bf16 %v2464_v6, %v2460_v4 }
 0x4ea   : > { %1199 = vmatprep.subr.bf16.mxu0 %v1998_v10  ;;  %1770 = vmatprep.subr.bf16.mxu1 %v1998_v10  ;;  %v2003_v13 = vld [vmem:[%s1126_s10 + $0x10] ss:$8 sps:$4 sm:$0xff]   ;;  %v2004_v14 = vld [vmem:[%s1126_s10 + $0x24] ss:$8 sps:$4 sm:$0xff]   ;;  %v2006_v15 = vld [vmem:[%s1126_s10 + $0x20] ss:$8 sps:$4 sm:$0xff]  }
 0x4eb   : > { %1200 = vmatpush1.bf16.msra.mxu0 %v2000_v11  ;;  %1774 = vmatpush1.bf16.msra.mxu1 %v2000_v11  ;;  %v2007_v16 = vld [vmem:[%s1126_s10 + $0x34] ss:$8 sps:$4 sm:$0xff]   ;;  %v2009_v17 = vld [vmem:[%s1126_s10 + $0x30] ss:$8 sps:$4 sm:$0xff]   ;;  %v1088_v50 = vld [vmem:[#allocation2 + $0x20] sm:$0xff] }
 0x4ec   : > { %1201 = vmatprep.subr.bf16.mxu0 %v2001_v12  ;;  %1771 = vmatprep.subr.bf16.mxu1 %v2001_v12  ;;  %v1087_v38 = vld [vmem:[#allocation2 + $0x18] sm:$0xff]  ;;  %v1104_v51 = vld [vmem:[#allocation2 + $0xa0] sm:$0xff]  ;;  %v1089_v52 = vld [vmem:[#allocation2 + $0x28] sm:$0xff] }
 0x4ed   : > { %v1103_v39 = vld [vmem:[#allocation2 + $0x98] sm:$0xff]  ;;  %v1105_v53 = vld [vmem:[#allocation2 + $0xa8] sm:$0xff]  ;;  %v1090_v56 = vld [vmem:[#allocation2 + $0x30] sm:$0xff] }
 0x4ee   : > { %v1106_v57 = vld [vmem:[#allocation2 + $0xb0] sm:$0xff]  ;;  %v1091_v0 = vld [vmem:[#allocation2 + $0x38] sm:$0xff]  ;;  %v1092_v10 = vld [vmem:[#allocation2 + $0x40] sm:$0xff] }
 0x4ef   : > { %1202 = vmatpush1.bf16.msra.mxu0 %v2003_v13  ;;  %1775 = vmatpush1.bf16.msra.mxu1 %v2003_v13  ;;  %v1107_v61 = vld [vmem:[#allocation2 + $0xb8] sm:$0xff]  ;;  %v1108_v11 = vld [vmem:[#allocation2 + $0xc0] sm:$0xff]  ;;  %v1093_v12 = vld [vmem:[#allocation2 + $0x48] sm:$0xff] }
 0x4f0   : > { %1203 = vmatprep.subr.bf16.mxu0 %v2004_v14  ;;  %1772 = vmatprep.subr.bf16.mxu1 %v2004_v14  ;;  %v1109_v13 = vld [vmem:[#allocation2 + $0xc8] sm:$0xff] }
 0x4f3   : > { %1204 = vmatpush1.bf16.msra.mxu0 %v2006_v15  ;;  %1776 = vmatpush1.bf16.msra.mxu1 %v2006_v15 }
 0x4f4   : > { %1205 = vmatprep.subr.bf16.mxu0 %v2007_v16  ;;  %1773 = vmatprep.subr.bf16.mxu1 %v2007_v16  ;;  %v1094_v16 = vld [vmem:[#allocation2 + $0x50] sm:$0xff] }
 0x4f7   : > { %1206 = vmatpush1.bf16.msra.mxu0 %v2009_v17  ;;  %1777 = vmatpush1.bf16.msra.mxu1 %v2009_v17  ;;  %v1110_v17 = vld [vmem:[#allocation2 + $0xd0] sm:$0xff] }
 0x4fa   : > { %1656 = vmatmul.mubr.msk.bf16.vlgmr.msra.gmra.mrb[32].mxu0 %vm653_vm0, %v1116_v18  ;;  %1660 = vmatmul.mubr.msk.bf16.vlgmr.msra.gmra.mrb[32].mxu1 %vm653_vm0, %v1120_v20 }
 0x4fb   : > { %1241 = vmatprep.mubr.bf16.mxu0 %v2108_v9  ;;  %1281 = vmatprep.mubr.bf16.mxu1 %v2108_v9 }
 0x502   : > { %1657 = vmatmul.mubr.msk.bf16.gmra.mrb[36].mxu0 %vm653_vm0, %v1117_v21  ;;  %1661 = vmatmul.mubr.msk.bf16.gmra.mrb[36].mxu1 %vm653_vm0, %v1121_v19 }
 0x503   : > { %1251 = vmatprep.mubr.bf16.mxu0 %v2108_v9  ;;  %1291 = vmatprep.mubr.bf16.mxu1 %v2108_v9 }
 0x50a   : > { %1658 = vmatmul.mubr.msk.bf16.gmra.mrb[40].mxu0 %vm653_vm0, %v1118_v22  ;;  %1662 = vmatmul.mubr.msk.bf16.gmra.mrb[40].mxu1 %vm653_vm0, %v1122_v23  ;;  %v1095_v22 = vld [vmem:[#allocation2 + $0x58] sm:$0xff] }
 0x50b   : > { %1261 = vmatprep.mubr.bf16.mxu0 %v2108_v9  ;;  %1301 = vmatprep.mubr.bf16.mxu1 %v2108_v9  ;;  %v1111_v23 = vld [vmem:[#allocation2 + $0xd8] sm:$0xff] }
 0x512   : > { %1659 = vmatmul.mubr.msk.bf16.gmra.mrb[44].mxu0 %vm653_vm0, %v1119_v24  ;;  %1663 = vmatmul.mubr.msk.bf16.gmra.mrb[44].mxu1 %vm653_vm0, %v1123_v25 }
 0x5cd   : > { %v1233_v30 = vpop.f32.mrb[32].mxu0  ;;  %v1273_v31 = vpop.f32.mrb[32].mxu1 }
 0x5ce   : > { %v1312_v34 = vadd.f32 %v1233_v30, %v1084_v26  ;;  %v1328_v35 = vadd.f32 %v1273_v31, %v1100_v28  ;;  %v1235_v36 = vpop.f32.mrb[33].mxu0  ;;  %v1275_v37 = vpop.f32.mrb[33].mxu1 }
 0x5cf   : > { %v1313_v40 = vadd.f32 %v1235_v36, %v1085_v27  ;;  %v1329_v41 = vadd.f32 %v1275_v37, %v1101_v29  ;;  %v1237_v43 = vpop.f32.mrb[34].mxu0  ;;  %v1277_v42 = vpop.f32.mrb[34].mxu1  ;;  %v1097_v36 = vld [vmem:[#allocation2 + $0x68] sm:$0xff] }
 0x5d0   : > { %1344 = vst [vmem:[#allocation2] sm:$0xff] %v1312_v34  ;;  %1360 = vst [vmem:[#allocation2 + $0x80] sm:$0xff] %v1328_v35  ;;  %v1314_v44 = vadd.f32 %v1237_v43, %v1086_v32  ;;  %v1330_v45 = vadd.f32 %v1277_v42, %v1102_v33  ;;  %v1239_v46 = vpop.f32.mrb[35].mxu0  ;;  %v1279_v47 = vpop.f32.mrb[35].mxu1  ;;  %v1096_v34 = vld [vmem:[#allocation2 + $0x60] sm:$0xff]  ;;  %v1113_v37 = vld [vmem:[#allocation2 + $0xe8] sm:$0xff] }
 0x5d1   : > { %1345 = vst [vmem:[#allocation2 + $0x8] sm:$0xff] %v1313_v40  ;;  %1361 = vst [vmem:[#allocation2 + $0x88] sm:$0xff] %v1329_v41  ;;  %v1315_v48 = vadd.f32 %v1239_v46, %v1087_v38  ;;  %v1331_v49 = vadd.f32 %v1279_v47, %v1103_v39  ;;  %v1112_v35 = vld [vmem:[#allocation2 + $0xe0] sm:$0xff]  ;;  %v1098_v40 = vld [vmem:[#allocation2 + $0x70] sm:$0xff] }
 0x5d2   : > { %1346 = vst [vmem:[#allocation2 + $0x10] sm:$0xff] %v1314_v44  ;;  %1362 = vst [vmem:[#allocation2 + $0x90] sm:$0xff] %v1330_v45  ;;  %v1114_v41 = vld [vmem:[#allocation2 + $0xf0] sm:$0xff]  ;;  %v1099_v46 = vld [vmem:[#allocation2 + $0x78] sm:$0xff] }
 0x5d3   : > { %1347 = vst [vmem:[#allocation2 + $0x18] sm:$0xff] %v1315_v48  ;;  %1363 = vst [vmem:[#allocation2 + $0x98] sm:$0xff] %v1331_v49  ;;  %v1115_v47 = vld [vmem:[#allocation2 + $0xf8] sm:$0xff] }
 0x5d5   : > { %v1243_v54 = vpop.f32.mrb[36].mxu0  ;;  %v1283_v55 = vpop.f32.mrb[36].mxu1 }
 0x5d6   : > { %v1316_v58 = vadd.f32 %v1243_v54, %v1088_v50  ;;  %v1332_v59 = vadd.f32 %v1283_v55, %v1104_v51  ;;  %v1245_v60 = vpop.f32.mrb[37].mxu0  ;;  %v1285_v62 = vpop.f32.mrb[37].mxu1 }
 0x5d7   : > { %v1317_v63 = vadd.f32 %v1245_v60, %v1089_v52  ;;  %v1333_v1 = vadd.f32 %v1285_v62, %v1105_v53  ;;  %v1247_v2 = vpop.f32.mrb[38].mxu0  ;;  %v1287_v3 = vpop.f32.mrb[38].mxu1  ;;  %v1380_v62 = vld [vmem:[#allocation2] sm:$0xff] (!%p1664_p0) }
 0x5d8   : > { %1348 = vst [vmem:[#allocation2 + $0x20] sm:$0xff] %v1316_v58  ;;  %1364 = vst [vmem:[#allocation2 + $0xa0] sm:$0xff] %v1332_v59  ;;  %v1318_v4 = vadd.f32 %v1247_v2, %v1090_v56  ;;  %v1334_v5 = vadd.f32 %v1287_v3, %v1106_v57  ;;  %v1249_v6 = vpop.f32.mrb[39].mxu0  ;;  %v1289_v7 = vpop.f32.mrb[39].mxu1  ;;  %v1414_v58 = vlaneseq (!%p1664_p0)  ;;  %v1412_v59 = vld [vmem:[%s2638_s3] sm:$0x3] (!%p1664_p0) }
 0x5d9   : > { %1349 = vst [vmem:[#allocation2 + $0x28] sm:$0xff] %v1317_v63  ;;  %1365 = vst [vmem:[#allocation2 + $0xa8] sm:$0xff] %v1333_v1  ;;  %v1319_v8 = vadd.f32 %v1249_v6, %v1091_v0  ;;  %v1335_v9 = vadd.f32 %v1289_v7, %v1107_v61  ;;  %v1381_v0 = vld [vmem:[#allocation2 + $0x8] sm:$0xff] (!%p1664_p0)  ;;  %v1382_v61 = vld [vmem:[#allocation2 + $0x10] sm:$0xff] (!%p1664_p0) }
 0x5da   : > { %1350 = vst [vmem:[#allocation2 + $0x30] sm:$0xff] %v1318_v4  ;;  %1366 = vst [vmem:[#allocation2 + $0xb0] sm:$0xff] %v1334_v5  ;;  %v1415_v60 = vshrl.u32 (!%p1664_p0), %v1414_v58, 7  ;;  %v1383_v63 = vld [vmem:[#allocation2 + $0x18] sm:$0xff] (!%p1664_p0) }
 0x5db   : > { %1351 = vst [vmem:[#allocation2 + $0x38] sm:$0xff] %v1319_v8  ;;  %1367 = vst [vmem:[#allocation2 + $0xb8] sm:$0xff] %v1335_v9 }
 0x5dc   : > { %v1416_v1 = vsub.s32 (!%p1664_p0), 0, %v1415_v60  ;;  %v1420_v2 = vsub.s32 (!%p1664_p0), 1, %v1415_v60 }
 0x5dd   : > { %v1253_v14 = vpop.f32.mrb[40].mxu0  ;;  %v1293_v15 = vpop.f32.mrb[40].mxu1 }
 0x5de   : > { %v1320_v18 = vadd.f32 %v1253_v14, %v1092_v10  ;;  %v1336_v20 = vadd.f32 %v1293_v15, %v1108_v11  ;;  %v1255_v21 = vpop.f32.mrb[41].mxu0  ;;  %v1295_v19 = vpop.f32.mrb[41].mxu1  ;;  %v2504_v10 = vrot.slane (!%p1664_p0), %v1412_v59, %v1416_v1  ;;  %v2506_v11 = vrot.slane (!%p1664_p0), %v1412_v59, %v1420_v2 }
 0x5df   : > { %v1321_v24 = vadd.f32 %v1255_v21, %v1093_v12  ;;  %v1337_v25 = vadd.f32 %v1295_v19, %v1109_v13  ;;  %v1257_v26 = vpop.f32.mrb[42].mxu0  ;;  %v1297_v28 = vpop.f32.mrb[42].mxu1  ;;  %v1384_v3 = vld [vmem:[#allocation2 + $0x20] sm:$0xff] (!%p1664_p0) }
 0x5e0   : > { %1352 = vst [vmem:[#allocation2 + $0x40] sm:$0xff] %v1320_v18  ;;  %1368 = vst [vmem:[#allocation2 + $0xc0] sm:$0xff] %v1336_v20  ;;  %v1322_v27 = vadd.f32 %v1257_v26, %v1094_v16  ;;  %v1338_v29 = vadd.f32 %v1297_v28, %v1110_v17  ;;  %v1259_v30 = vpop.f32.mrb[43].mxu0  ;;  %v1299_v31 = vpop.f32.mrb[43].mxu1  ;;  %v1385_v4 = vld [vmem:[#allocation2 + $0x28] sm:$0xff] (!%p1664_p0)  ;;  %v1396_v17 = vld [vmem:[#allocation2 + $0x80] sm:$0xff] (!%p1664_p0)  ;;  %v1424_v18 = vadd.f32 (!%p1664_p0), %v2504_v10, %v1380_v62 }
 0x5e1   : > { %1353 = vst [vmem:[#allocation2 + $0x48] sm:$0xff] %v1321_v24  ;;  %1369 = vst [vmem:[#allocation2 + $0xc8] sm:$0xff] %v1337_v25  ;;  %v1323_v32 = vadd.f32 %v1259_v30, %v1095_v22  ;;  %v1339_v33 = vadd.f32 %v1299_v31, %v1111_v23  ;;  %v1386_v5 = vld [vmem:[#allocation2 + $0x30] sm:$0xff] (!%p1664_p0)  ;;  %v1425_v20 = vadd.f32 (!%p1664_p0), %v2506_v11, %v1381_v0  ;;  %v1397_v22 = vld [vmem:[#allocation2 + $0x88] sm:$0xff] (!%p1664_p0) }
 0x5e2   : > { %1354 = vst [vmem:[#allocation2 + $0x50] sm:$0xff] %v1322_v27  ;;  %1370 = vst [vmem:[#allocation2 + $0xd0] sm:$0xff] %v1338_v29  ;;  %v1387_v6 = vld [vmem:[#allocation2 + $0x38] sm:$0xff] (!%p1664_p0)  ;;  %v1426_v21 = vadd.f32 (!%p1664_p0), %v2504_v10, %v1382_v61  ;;  %v1427_v19 = vadd.f32 (!%p1664_p0), %v2506_v11, %v1383_v63  ;;  %v1398_v23 = vld [vmem:[#allocation2 + $0x90] sm:$0xff] (!%p1664_p0)  ;;  %v1428_v25 = vadd.f32 (!%p1664_p0), %v2504_v10, %v1384_v3 }
 0x5e3   : > { %1355 = vst [vmem:[#allocation2 + $0x58] sm:$0xff] %v1323_v32  ;;  %1371 = vst [vmem:[#allocation2 + $0xd8] sm:$0xff] %v1339_v33  ;;  %v1399_v24 = vld [vmem:[#allocation2 + $0x98] sm:$0xff] (!%p1664_p0)  ;;  %v1429_v26 = vadd.f32 (!%p1664_p0), %v2506_v11, %v1385_v4  ;;  %v1430_v28 = vadd.f32 (!%p1664_p0), %v2504_v10, %v1386_v5  ;;  %v1431_v27 = vadd.f32 (!%p1664_p0), %v2506_v11, %v1387_v6  ;;  %v1400_v29 = vld [vmem:[#allocation2 + $0xa0] sm:$0xff] (!%p1664_p0) }
 0x5e4   : > { %v1401_v30 = vld [vmem:[#allocation2 + $0xa8] sm:$0xff] (!%p1664_p0)  ;;  %v1402_v31 = vld [vmem:[#allocation2 + $0xb0] sm:$0xff] (!%p1664_p0)  ;;  %1456 = vst [vmem:[%s2469_s30] sm:$0xff] (!%p1664_p0), %v1424_v18  ;;  %1457 = vst [vmem:[%s2469_s30 + $0x8] sm:$0xff] (!%p1664_p0), %v1425_v20 }
 0x5e5   : > { %v1263_v38 = vpop.f32.mrb[44].mxu0  ;;  %v1303_v39 = vpop.f32.mrb[44].mxu1  ;;  %1379 = sbr.rel (%p1664_p0) target bundleno = 1528 (0x5f8), region = 44  ;;  %1458 = vst [vmem:[%s2469_s30 + $0x10] sm:$0xff] (!%p1664_p0), %v1426_v21  ;;  %1459 = vst [vmem:[%s2469_s30 + $0x18] sm:$0xff] (!%p1664_p0), %v1427_v19 }
 0x5e6   : > { %v1324_v43 = vadd.f32 %v1263_v38, %v1096_v34  ;;  %v1340_v42 = vadd.f32 %v1303_v39, %v1112_v35  ;;  %v1265_v44 = vpop.f32.mrb[45].mxu0  ;;  %v1305_v45 = vpop.f32.mrb[45].mxu1  ;;  %1460 = vst [vmem:[%s2469_s30 + $0x20] sm:$0xff] (!%p1664_p0), %v1428_v25  ;;  %1461 = vst [vmem:[%s2469_s30 + $0x28] sm:$0xff] (!%p1664_p0), %v1429_v26 }
 0x5e7   : > { %v1325_v48 = vadd.f32 %v1265_v44, %v1097_v36  ;;  %v1341_v49 = vadd.f32 %v1305_v45, %v1113_v37  ;;  %v1267_v50 = vpop.f32.mrb[46].mxu0  ;;  %v1307_v51 = vpop.f32.mrb[46].mxu1  ;;  %v1388_v7 = vld [vmem:[#allocation2 + $0x40] sm:$0xff] (!%p1664_p0)  ;;  %v1403_v36 = vld [vmem:[#allocation2 + $0xb8] sm:$0xff] (!%p1664_p0)  ;;  %1462 = vst [vmem:[%s2469_s30 + $0x30] sm:$0xff] (!%p1664_p0), %v1430_v28  ;;  %1463 = vst [vmem:[%s2469_s30 + $0x38] sm:$0xff] (!%p1664_p0), %v1431_v27 }
 0x5e8   : > { %1356 = vst [vmem:[#allocation2 + $0x60] sm:$0xff] %v1324_v43  ;;  %1372 = vst [vmem:[#allocation2 + $0xe0] sm:$0xff] %v1340_v42  ;;  %v1326_v52 = vadd.f32 %v1267_v50, %v1098_v40  ;;  %v1342_v53 = vadd.f32 %v1307_v51, %v1114_v41  ;;  %v1269_v54 = vpop.f32.mrb[47].mxu0  ;;  %v1309_v55 = vpop.f32.mrb[47].mxu1  ;;  %v1389_v8 = vld [vmem:[#allocation2 + $0x48] sm:$0xff] (!%p1664_p0)  ;;  %v1432_v32 = vadd.f32 (!%p1664_p0), %v2504_v10, %v1388_v7  ;;  %v1404_v37 = vld [vmem:[#allocation2 + $0xc0] sm:$0xff] (!%p1664_p0) }
 0x5e9   : > { %1357 = vst [vmem:[#allocation2 + $0x68] sm:$0xff] %v1325_v48  ;;  %1373 = vst [vmem:[#allocation2 + $0xe8] sm:$0xff] %v1341_v49  ;;  %v1327_v56 = vadd.f32 %v1269_v54, %v1099_v46  ;;  %v1343_v57 = vadd.f32 %v1309_v55, %v1115_v47  ;;  %v1390_v9 = vld [vmem:[#allocation2 + $0x50] sm:$0xff] (!%p1664_p0)  ;;  %v1433_v33 = vadd.f32 (!%p1664_p0), %v2506_v11, %v1389_v8  ;;  %v1405_v38 = vld [vmem:[#allocation2 + $0xc8] sm:$0xff] (!%p1664_p0) }
 0x5ea   : > { %1358 = vst [vmem:[#allocation2 + $0x70] sm:$0xff] %v1326_v52  ;;  %1374 = vst [vmem:[#allocation2 + $0xf0] sm:$0xff] %v1342_v53  ;;  %v1391_v12 = vld [vmem:[#allocation2 + $0x58] sm:$0xff] (!%p1664_p0)  ;;  %v1434_v34 = vadd.f32 (!%p1664_p0), %v2504_v10, %v1390_v9  ;;  %v1406_v42 = vld [vmem:[#allocation2 + $0xd0] sm:$0xff] (!%p1664_p0)  ;;  %v1440_v46 = vadd.f32 (!%p1664_p0), %v2504_v10, %v1396_v17  ;;  %v1441_v47 = vadd.f32 (!%p1664_p0), %v2506_v11, %v1397_v22 }
 0x5eb   : > { %1359 = vst [vmem:[#allocation2 + $0x78] sm:$0xff] %v1327_v56  ;;  %1375 = vst [vmem:[#allocation2 + $0xf8] sm:$0xff] %v1343_v57  ;;  %v1435_v35 = vadd.f32 (!%p1664_p0), %v2506_v11, %v1391_v12  ;;  %v1407_v44 = vld [vmem:[#allocation2 + $0xd8] sm:$0xff] (!%p1664_p0)  ;;  %v1442_v48 = vadd.f32 (!%p1664_p0), %v2504_v10, %v1398_v23  ;;  %v1443_v49 = vadd.f32 (!%p1664_p0), %v2506_v11, %v1399_v24 }
 0x5ec   : > { %1464 = vst [vmem:[%s2469_s30 + $0x40] sm:$0xff] %v1432_v32  ;;  %1465 = vst [vmem:[%s2469_s30 + $0x48] sm:$0xff] %v1433_v33  ;;  %v1444_v53 = vadd.f32 %v2504_v10, %v1400_v29  ;;  %v1445_v54 = vadd.f32 %v2506_v11, %v1401_v30  ;;  %v1446_v55 = vadd.f32 %v2504_v10, %v1402_v31 }
 0x5ed   : > { %1466 = vst [vmem:[%s2469_s30 + $0x50] sm:$0xff] %v1434_v34  ;;  %1467 = vst [vmem:[%s2469_s30 + $0x58] sm:$0xff] %v1435_v35  ;;  %v1447_v56 = vadd.f32 %v2506_v11, %v1403_v36  ;;  %v1448_v57 = vadd.f32 %v2504_v10, %v1404_v37  ;;  %v1449_v58 = vadd.f32 %v2506_v11, %v1405_v38 }
 0x5ee   : > { %1472 = vst [vmem:[%s2469_s30 + $0x80] sm:$0xff] %v1440_v46  ;;  %1473 = vst [vmem:[%s2469_s30 + $0x88] sm:$0xff] %v1441_v47  ;;  %v1450_v59 = vadd.f32 %v2504_v10, %v1406_v42  ;;  %v1451_v60 = vadd.f32 %v2506_v11, %v1407_v44 }
 0x5ef   : > { %v1392_v13 = vld [vmem:[#allocation2 + $0x60] sm:$0xff]  ;;  %1474 = vst [vmem:[%s2469_s30 + $0x90] sm:$0xff] %v1442_v48  ;;  %1475 = vst [vmem:[%s2469_s30 + $0x98] sm:$0xff] %v1443_v49 }
 0x5f0   : > { %v1393_v14 = vld [vmem:[#allocation2 + $0x68] sm:$0xff]  ;;  %v1436_v39 = vadd.f32 %v2504_v10, %v1392_v13  ;;  %v1408_v45 = vld [vmem:[#allocation2 + $0xe0] sm:$0xff]  ;;  %1476 = vst [vmem:[%s2469_s30 + $0xa0] sm:$0xff] %v1444_v53  ;;  %1477 = vst [vmem:[%s2469_s30 + $0xa8] sm:$0xff] %v1445_v54 }
 0x5f1   : > { %v1394_v15 = vld [vmem:[#allocation2 + $0x70] sm:$0xff]  ;;  %v1437_v40 = vadd.f32 %v2506_v11, %v1393_v14  ;;  %v1409_v50 = vld [vmem:[#allocation2 + $0xe8] sm:$0xff]  ;;  %1478 = vst [vmem:[%s2469_s30 + $0xb0] sm:$0xff] %v1446_v55  ;;  %1479 = vst [vmem:[%s2469_s30 + $0xb8] sm:$0xff] %v1447_v56  ;;  %v1452_v62 = vadd.f32 %v2504_v10, %v1408_v45 }
 0x5f2   : > { %v1395_v16 = vld [vmem:[#allocation2 + $0x78] sm:$0xff]  ;;  %v1438_v41 = vadd.f32 %v2504_v10, %v1394_v15  ;;  %v1410_v51 = vld [vmem:[#allocation2 + $0xf0] sm:$0xff]  ;;  %1468 = vst [vmem:[%s2469_s30 + $0x60] sm:$0xff] %v1436_v39  ;;  %v1453_v0 = vadd.f32 %v2506_v11, %v1409_v50  ;;  %1480 = vst [vmem:[%s2469_s30 + $0xc0] sm:$0xff] %v1448_v57 }
 0x5f3   : > { %v1439_v43 = vadd.f32 %v2506_v11, %v1395_v16  ;;  %v1411_v52 = vld [vmem:[#allocation2 + $0xf8] sm:$0xff]  ;;  %1469 = vst [vmem:[%s2469_s30 + $0x68] sm:$0xff] %v1437_v40  ;;  %v1454_v61 = vadd.f32 %v2504_v10, %v1410_v51  ;;  %1481 = vst [vmem:[%s2469_s30 + $0xc8] sm:$0xff] %v1449_v58 }
 0x5f4   : > { %1470 = vst [vmem:[%s2469_s30 + $0x70] sm:$0xff] %v1438_v41  ;;  %v1455_v63 = vadd.f32 %v2506_v11, %v1411_v52  ;;  %1482 = vst [vmem:[%s2469_s30 + $0xd0] sm:$0xff] %v1450_v59 }
 0x5f5   : > { %1471 = vst [vmem:[%s2469_s30 + $0x78] sm:$0xff] %v1439_v43  ;;  %1483 = vst [vmem:[%s2469_s30 + $0xd8] sm:$0xff] %v1451_v60 }
 0x5f6   : > { %1484 = vst [vmem:[%s2469_s30 + $0xe0] sm:$0xff] %v1452_v62  ;;  %1485 = vst [vmem:[%s2469_s30 + $0xe8] sm:$0xff] %v1453_v0 }
 0x5f7   : > { %1486 = vst [vmem:[%s2469_s30 + $0xf0] sm:$0xff] %v1454_v61  ;;  %1487 = vst [vmem:[%s2469_s30 + $0xf8] sm:$0xff] %v1455_v63 }
 0x5f8 PF: > { %s1673_s18 = sshll.u32 %s2092_s19, 12  ;;  %s1502_s24 = sshll.u32 %s2469_s30, 4  ;;  %s2579_s24 = int_to_ptr.vmem [resolvable:$true] %s1502_s24 }
 0x5f9   : > { %s2576_s23 = scalar_lea.hbm %s2639_s4, %s1673_s18  ;;  %s2583_s29 = scalar_lea.sflag [#allocation4], %s200_s6 }
 0x5fa   : > { %s2010_s7 = scalar_lea.vmem %s2579_s24, 4096  ;;  %s2109_s19 = smov [#allocation3]  }
 0x5fb   : > { %p2011_p1 = scmp.ne.s32.totalorder %s2579_s24, %s2010_s7  ;;  %s2014_s8 = sshll.u32 %s2109_s19, 4  ;;  %s2015_s8 = int_to_ptr.vmem [resolvable:$false] %s2014_s8 }
 0x5fc   : > { %s2016_s9 = scalar_lea.vmem %s2015_s8, 8192  ;;  %p2017_p5 = scmp.lt.s32.totalorder %s2579_s24, %s2015_s8 }
 0x5fd   : > { %p2012_p2 = pnand %p2011_p1, %p2186_p3  ;;  %p2018_p6 = scmp.lt.s32.totalorder %s2016_s9, %s2010_s7 }
 0x5ff   : > { %p2013_p4 = pneg %p2012_p2  ;;  %p2019_p7 = por %p2018_p6, %p2017_p5 }
 0x601   : > { %p2020_p8 = pnand %p2019_p7, %p2013_p4 }
 0x603   : > { %2023 = shalt.err (!%p2020_p8)
}
 0x604   : > { %s2024_s6 = scalar_lea.hbm %s2576_s23, 4096  ;;  %s2028_s11 = scalar_lea.hbm %s2639_s4, 8192 }
 0x605   : > { %p2025_p10 = scmp.ne.s32.totalorder %s2576_s23, %s2024_s6  ;;  %p2029_p13 = scmp.lt.u32.totalorder %s2576_s23, %s2639_s4 }
 0x606   : > { %p2030_p0 = scmp.lt.u32.totalorder %s2028_s11, %s2024_s6  ;;  %p2032_p2 = scmp.lt.u32.totalorder %s2024_s6, %s2576_s23 }
 0x607   : > { %p2026_p11 = pnand %p2025_p10, %p2186_p3 }
 0x608   : > { %p2031_p1 = por %p2030_p0, %p2029_p13 }
 0x609   : > { %p2027_p12 = pneg %p2026_p11 }
 0x60a   : > { %p2033_p4 = por %p2032_p2, %p2031_p1 }
 0x60c   : > { %p2034_p5 = pnand %p2033_p4, %p2027_p12 }
 0x60e   : > { %2037 = shalt.err (!%p2034_p5)
}
 0x60f   : > { %s2110_s13 = smov 256   ;;  %s2111_s14 = smov 16  }
 0x610   : > { %1786 = dma.vmem_to_hbm [thread:$0]  (%p2186_p3), %s2579_s24, 4096, %s2576_s23, %s2583_s29, %s2110_s13, %s2110_s13, %s2111_s14  }
 0x611 PF: > { %p1792_p6 = scmp.ge.s32.totalorder %s2104_s22, 2  ;;  %s1517_s7 = sand.u32 1, %s2076_s15  }
 0x612   : > { %s1518_s19 = scalar_lea.sflag [#allocation4], %s1517_s7 }
 0x613   : > { %p1789_p7 = pnand %p1792_p6, %p2196_p9 }
 0x615   : > { %2071 = dma.done.wait (!%p1789_p7), %s1518_s19, 4096  }
 0x616   : > { %2073 = vsyncadd (!%p1789_p7), %s1518_s19, 4294963200  ;;  %s17_s22 = sadd.s32 1, %s2104_s22   ;;  %s2642_s15 = smov %s2080_s16 }
 0x617   : > { %p14_p8 = scmp.ge.s32.totalorder %s17_s22, 10   ;;  %s2643_s16 = smov %s2084_s17 }
 0x618   : > { %s2644_s17 = smov %s2204_s5  ;;  %s2645_s18 = smov %s2096_s20 }
 0x619   : > { %s2646_s19 = smov %s2100_s21  ;;  %s2647_s20 = smov %s2650_s25 }
 0x61a   : > { %s2648_s21 = smov %s2654_s26  ;;  %16 = sbr.rel (!%p14_p8) target bundleno = 5 (0x5), region = 81 }
 0x621   :  { %1523 = vsyncpa [#allocation4], 1 }
 0x622   :  { %1525 = vsyncpa [#allocation4 + $0x1], 1 }

</bundles_post_ra>
